<compile_context>
chip_gen: v7x
topology: tpu7x:2x2x1
jax: 0.10.0
libtpu: 0.0.40
codegen_flags: <defaults>
</compile_context>

<pallas_src>
import jax
import jax.numpy as jnp
from jax.experimental import pallas as pl
from jax.experimental.pallas import tpu as pltpu

_HIDDEN = (128, 64, 32, 64, 128)
_MIB = 1024 * 1024


def _round_up(x, m):
    return (x + m - 1) // m * m


def _vmem_capacity_bytes():
    """Best-effort physical VMEM capacity (v5e/v6e: 128 MiB, v7x: 64 MiB)."""
    default = 64 * _MIB
    try:
        info = pltpu.get_tpu_info()
        cap = getattr(info, "vmem_capacity_bytes", None)
        return int(cap) if cap else default
    except Exception:
        return default


def _autoencoder_kernel(x_ref,
                        w1, b1, w2, b2, w3, b3,
                        w4, b4, w5, b5, w6, b6,
                        o_ref):
    """Fused encoder+decoder for one batch tile: 6 matmuls, 5 ReLUs."""

    def lin(h, w_ref, b_ref, relu):
        # bf16 operands on the MXU, f32 accumulation; bias/ReLU in f32 (VPU).
        y = jnp.dot(h.astype(w_ref.dtype), w_ref[...],
                    preferred_element_type=jnp.float32)
        y = y + b_ref[...]
        return jnp.maximum(y, 0.0) if relu else y

    # x is streamed in bf16 -> already the matmul dtype; no extra cast pass.
    h = x_ref[...]
    # encoder
    h = lin(h, w1, b1, True)    # Dp  -> 128
    h = lin(h, w2, b2, True)    # 128 -> 64
    h = lin(h, w3, b3, True)    # 64  -> 32
    # decoder
    h = lin(h, w4, b4, True)    # 32  -> 64
    h = lin(h, w5, b5, True)    # 64  -> 128
    y = lin(h, w6, b6, False)   # 128 -> Dp  (no final activation)
    o_ref[...] = y.astype(o_ref.dtype)


def deep_autoencoder(x, params, *, block_batch=1024, io_dtype=jnp.bfloat16):
    """x: [B, input_dim] f32; params: 6 tuples (w: (in,out) f32, b: (1,out) f32)."""
    B, input_dim = x.shape
    io_bytes = jnp.dtype(io_dtype).itemsize

    # Feature padding to a multiple of 128 (lane-dense loads/stores, (8,128) rule).
    Dp = _round_up(input_dim, 128)

    # ---- Weights: cast to bf16 once; zero-pad W1/W6/b6 for the padded feature dim.
    flat = []
    weight_bytes = 0
    for li, (w, b) in enumerate(params):
        if li == 0 and Dp != input_dim:
            w = jnp.pad(w, ((0, Dp - input_dim), (0, 0)))
        if li == 5 and Dp != input_dim:
            w = jnp.pad(w, ((0, 0), (0, Dp - input_dim)))
            b = jnp.pad(b, ((0, 0), (0, Dp - input_dim)))
        wb = w.astype(jnp.bfloat16)
        bf = b.astype(jnp.float32)
        flat += [wb, bf]
        weight_bytes += wb.size * 2 + bf.size * 4

    # ---- Balanced batch tiling: padding < 8 rows, all tiles the same size.
    num_tiles = max(1, pl.cdiv(B, block_batch))
    if num_tiles == 1 and B >= 16:
        num_tiles = 2          # keep both v7x TensorCores busy (harmless on v5e/v6e)
    TB = _round_up(pl.cdiv(B, num_tiles), 8)

    def vmem_footprint(tb):
        io = 2 * 2 * tb * Dp * io_bytes          # x + out tiles, double-buffered
        inter = tb * Dp * 4 + 6 * tb * 128 * 4   # f32 intermediates inside the body
        return io + weight_bytes + inter

    # Shrink the tile (more grid steps) if the footprint would blow the VMEM
    # budget (matters on v7x's 64 MiB or for very large input_dim).
    capacity = _vmem_capacity_bytes()
    budget = capacity // 2
    while vmem_footprint(TB) > budget and TB > 8:
        num_tiles += 1
        TB = _round_up(pl.cdiv(B, num_tiles), 8)
    Bp = num_tiles * TB

    vmem_limit = int(min(max(2 * vmem_footprint(TB), 32 * _MIB),
                         int(0.95 * capacity)))

    # ---- Input: bf16 stream (halves HBM traffic) + zero padding.
    xp = x.astype(io_dtype)
    if (Bp, Dp) != (B, input_dim):
        xp = jnp.pad(xp, ((0, Bp - B), (0, Dp - input_dim)))

    # Advisory cost estimate (kernel is HBM-bandwidth bound on streaming x/out).
    dims = [Dp] + list(_HIDDEN) + [Dp]
    flops = 2 * Bp * sum(dims[i] * dims[i + 1] for i in range(6))
    bytes_accessed = 2 * Bp * Dp * io_bytes + weight_bytes
    cost = pl.CostEstimate(flops=flops, transcendentals=0,
                           bytes_accessed=bytes_accessed)

    def _call(weight_spec_kwargs):
        # Weights/biases: constant index_map -> resident across all grid steps.
        w_specs = [pl.BlockSpec(arr.shape, lambda g: (0, 0), **weight_spec_kwargs)
                   for arr in flat]
        return pl.pallas_call(
            _autoencoder_kernel,
            out_shape=jax.ShapeDtypeStruct((Bp, Dp), io_dtype),
            grid=(num_tiles,),
            in_specs=[pl.BlockSpec((TB, Dp), lambda g: (g, 0))] + w_specs,
            out_specs=pl.BlockSpec((TB, Dp), lambda g: (g, 0)),
            compiler_params=pltpu.CompilerParams(
                dimension_semantics=("parallel",),
                vmem_limit_bytes=vmem_limit),
            cost_estimate=cost,
        )(xp, *flat)

    if hasattr(pl, "Buffered"):
        try:
            # Never re-fetched after step 0 -> single buffer halves their VMEM.
            out = _call({"pipeline_mode": pl.Buffered(1)})
        except Exception:
            out = _call({})
    else:
        out = _call({})

    out = out[:B, :input_dim].astype(x.dtype)
    return out


def init_params(key, input_dim):
    """Deterministic init mimicking PyTorch nn.Linear default:
    U(-1/sqrt(fan_in), 1/sqrt(fan_in)) for both weight and bias."""
    dims = [input_dim] + list(_HIDDEN) + [input_dim]
    params = []
    for i in range(6):
        fan_in, fan_out = dims[i], dims[i + 1]
        key, kw, kb = jax.random.split(key, 3)
        bound = 1.0 / jnp.sqrt(jnp.float32(fan_in))
        w = jax.random.uniform(kw, (fan_in, fan_out), jnp.float32, -bound, bound)
        b = jax.random.uniform(kb, (1, fan_out), jnp.float32, -bound, bound)
        params.append((w, b))
    return params


def reference_forward(x, params):
    """Pure-JAX f32 reference for correctness checking."""
    h = x
    for i, (w, b) in enumerate(params):
        h = h @ w + b
        if i < 5:
            h = jnp.maximum(h, 0.0)
    return h


if __name__ == "__main__":
    key = jax.random.PRNGKey(0)
    batch, input_dim = 8, 256

    key, kx = jax.random.split(key)
    x = jax.random.normal(kx, (batch, input_dim), jnp.float32)
    params = init_params(key, input_dim)

    # Small-batch path (single grid step, no padding).
    out = jax.block_until_ready(deep_autoencoder(x, params))
    ref = reference_forward(x, params)
    assert out.shape == (batch, input_dim)
    # bf16 matmul operands / bf16 I/O with f32 accumulation -> relaxed tolerance.
    assert jnp.allclose(out, ref, atol=3e-2, rtol=3e-2), "mismatch (small batch)"

    # Medium batch, default tile: forced 2-step grid (v7x both-core path) + <8 pad rows.
    key, kx2 = jax.random.split(key)
    x2 = jax.random.normal(kx2, (600, input_dim), jnp.float32)
    out2 = jax.block_until_ready(deep_autoencoder(x2, params))
    ref2 = reference_forward(x2, params)
    assert out2.shape == x2.shape
    assert jnp.allclose(out2, ref2, atol=3e-2, rtol=3e-2), "mismatch (2-tile batch)"

    # Multi-step balanced tiling path (3 tiles of 200 rows, zero padding).
    out3 = jax.block_until_ready(deep_autoencoder(x2, params, block_batch=256))
    assert out3.shape == x2.shape
    assert jnp.allclose(out3, ref2, atol=3e-2, rtol=3e-2), "mismatch (3-tile batch)"

    print("KERNEL_OK")
</pallas_src>

<mosaic_0001>
module attributes {stable_mosaic.version = 11 : i64} {
  func.func @_autoencoder_kernel(%arg0: i32, %arg1: memref<8x256xbf16, #tpu.memory_space<vmem>>, %arg2: memref<256x128xbf16, #tpu.memory_space<vmem>>, %arg3: memref<1x128xf32, #tpu.memory_space<vmem>>, %arg4: memref<128x64xbf16, #tpu.memory_space<vmem>>, %arg5: memref<1x64xf32, #tpu.memory_space<vmem>>, %arg6: memref<64x32xbf16, #tpu.memory_space<vmem>>, %arg7: memref<1x32xf32, #tpu.memory_space<vmem>>, %arg8: memref<32x64xbf16, #tpu.memory_space<vmem>>, %arg9: memref<1x64xf32, #tpu.memory_space<vmem>>, %arg10: memref<64x128xbf16, #tpu.memory_space<vmem>>, %arg11: memref<1x128xf32, #tpu.memory_space<vmem>>, %arg12: memref<128x256xbf16, #tpu.memory_space<vmem>>, %arg13: memref<1x256xf32, #tpu.memory_space<vmem>>, %arg14: memref<8x256xbf16, #tpu.memory_space<vmem>>) attributes {dimension_semantics = [#tpu.dimension_semantics<parallel>], iteration_bounds = array<i64: 1>, scalar_prefetch = 0 : i64, scratch_operands = 0 : i64, tpu.core_type = #tpu.core_type<tc>, window_params = [{transform_indices = @transform_0, window_bounds = array<i64: 8, 256>}, {pipeline_mode = #tpu.pipeline_mode<synchronous>, transform_indices = @transform_1, window_bounds = array<i64: 256, 128>}, {pipeline_mode = #tpu.pipeline_mode<synchronous>, transform_indices = @transform_2, window_bounds = array<i64: 1, 128>}, {pipeline_mode = #tpu.pipeline_mode<synchronous>, transform_indices = @transform_3, window_bounds = array<i64: 128, 64>}, {pipeline_mode = #tpu.pipeline_mode<synchronous>, transform_indices = @transform_4, window_bounds = array<i64: 1, 64>}, {pipeline_mode = #tpu.pipeline_mode<synchronous>, transform_indices = @transform_5, window_bounds = array<i64: 64, 32>}, {pipeline_mode = #tpu.pipeline_mode<synchronous>, transform_indices = @transform_6, window_bounds = array<i64: 1, 32>}, {pipeline_mode = #tpu.pipeline_mode<synchronous>, transform_indices = @transform_7, window_bounds = array<i64: 32, 64>}, {pipeline_mode = #tpu.pipeline_mode<synchronous>, transform_indices = @transform_8, window_bounds = array<i64: 1, 64>}, {pipeline_mode = #tpu.pipeline_mode<synchronous>, transform_indices = @transform_9, window_bounds = array<i64: 64, 128>}, {pipeline_mode = #tpu.pipeline_mode<synchronous>, transform_indices = @transform_10, window_bounds = array<i64: 1, 128>}, {pipeline_mode = #tpu.pipeline_mode<synchronous>, transform_indices = @transform_11, window_bounds = array<i64: 128, 256>}, {pipeline_mode = #tpu.pipeline_mode<synchronous>, transform_indices = @transform_12, window_bounds = array<i64: 1, 256>}, {transform_indices = @transform_13, window_bounds = array<i64: 8, 256>}]} {
    %c0 = arith.constant 0 : index
    %c0_0 = arith.constant 0 : index
    %0 = vector.load %arg1[%c0, %c0_0] : memref<8x256xbf16, #tpu.memory_space<vmem>>, vector<8x256xbf16>
    %c0_1 = arith.constant 0 : index
    %c0_2 = arith.constant 0 : index
    %1 = vector.load %arg2[%c0_1, %c0_2] : memref<256x128xbf16, #tpu.memory_space<vmem>>, vector<256x128xbf16>
    %cst = arith.constant dense<0.000000e+00> : vector<8x128xf32>
    %2 = tpu.matmul %0, %1, %cst {dimension_numbers = #tpu.dot_dimension_numbers<[1], [0], [0], [1], [0, 0, 1, 1], [], []>} : vector<8x256xbf16>, vector<256x128xbf16>, vector<8x128xf32> -> vector<8x128xf32>
    %c0_3 = arith.constant 0 : index
    %c0_4 = arith.constant 0 : index
    %3 = vector.load %arg3[%c0_3, %c0_4] : memref<1x128xf32, #tpu.memory_space<vmem>>, vector<1x128xf32>
    %4 = vector.broadcast %3 : vector<1x128xf32> to vector<8x128xf32>
    %5 = arith.addf %2, %4 : vector<8x128xf32>
    %cst_5 = arith.constant 0.000000e+00 : f32
    %6 = vector.broadcast %cst_5 : f32 to vector<8x128xf32>
    %7 = arith.maximumf %5, %6 : vector<8x128xf32>
    %8 = arith.truncf %7 : vector<8x128xf32> to vector<8x128xbf16>
    %c0_6 = arith.constant 0 : index
    %c0_7 = arith.constant 0 : index
    %9 = vector.load %arg4[%c0_6, %c0_7] : memref<128x64xbf16, #tpu.memory_space<vmem>>, vector<128x64xbf16>
    %cst_8 = arith.constant dense<0.000000e+00> : vector<8x64xf32>
    %10 = tpu.matmul %8, %9, %cst_8 {dimension_numbers = #tpu.dot_dimension_numbers<[1], [0], [0], [1], [0, 0, 1, 1], [], []>} : vector<8x128xbf16>, vector<128x64xbf16>, vector<8x64xf32> -> vector<8x64xf32>
    %c0_9 = arith.constant 0 : index
    %c0_10 = arith.constant 0 : index
    %11 = vector.load %arg5[%c0_9, %c0_10] : memref<1x64xf32, #tpu.memory_space<vmem>>, vector<1x64xf32>
    %12 = vector.broadcast %11 : vector<1x64xf32> to vector<8x64xf32>
    %13 = arith.addf %10, %12 : vector<8x64xf32>
    %cst_11 = arith.constant 0.000000e+00 : f32
    %14 = vector.broadcast %cst_11 : f32 to vector<8x64xf32>
    %15 = arith.maximumf %13, %14 : vector<8x64xf32>
    %16 = arith.truncf %15 : vector<8x64xf32> to vector<8x64xbf16>
    %c0_12 = arith.constant 0 : index
    %c0_13 = arith.constant 0 : index
    %17 = vector.load %arg6[%c0_12, %c0_13] : memref<64x32xbf16, #tpu.memory_space<vmem>>, vector<64x32xbf16>
    %cst_14 = arith.constant dense<0.000000e+00> : vector<8x32xf32>
    %18 = tpu.matmul %16, %17, %cst_14 {dimension_numbers = #tpu.dot_dimension_numbers<[1], [0], [0], [1], [0, 0, 1, 1], [], []>} : vector<8x64xbf16>, vector<64x32xbf16>, vector<8x32xf32> -> vector<8x32xf32>
    %c0_15 = arith.constant 0 : index
    %c0_16 = arith.constant 0 : index
    %19 = vector.load %arg7[%c0_15, %c0_16] : memref<1x32xf32, #tpu.memory_space<vmem>>, vector<1x32xf32>
    %20 = vector.broadcast %19 : vector<1x32xf32> to vector<8x32xf32>
    %21 = arith.addf %18, %20 : vector<8x32xf32>
    %cst_17 = arith.constant 0.000000e+00 : f32
    %22 = vector.broadcast %cst_17 : f32 to vector<8x32xf32>
    %23 = arith.maximumf %21, %22 : vector<8x32xf32>
    %24 = arith.truncf %23 : vector<8x32xf32> to vector<8x32xbf16>
    %c0_18 = arith.constant 0 : index
    %c0_19 = arith.constant 0 : index
    %25 = vector.load %arg8[%c0_18, %c0_19] : memref<32x64xbf16, #tpu.memory_space<vmem>>, vector<32x64xbf16>
    %cst_20 = arith.constant dense<0.000000e+00> : vector<8x64xf32>
    %26 = tpu.matmul %24, %25, %cst_20 {dimension_numbers = #tpu.dot_dimension_numbers<[1], [0], [0], [1], [0, 0, 1, 1], [], []>} : vector<8x32xbf16>, vector<32x64xbf16>, vector<8x64xf32> -> vector<8x64xf32>
    %c0_21 = arith.constant 0 : index
    %c0_22 = arith.constant 0 : index
    %27 = vector.load %arg9[%c0_21, %c0_22] : memref<1x64xf32, #tpu.memory_space<vmem>>, vector<1x64xf32>
    %28 = vector.broadcast %27 : vector<1x64xf32> to vector<8x64xf32>
    %29 = arith.addf %26, %28 : vector<8x64xf32>
    %cst_23 = arith.constant 0.000000e+00 : f32
    %30 = vector.broadcast %cst_23 : f32 to vector<8x64xf32>
    %31 = arith.maximumf %29, %30 : vector<8x64xf32>
    %32 = arith.truncf %31 : vector<8x64xf32> to vector<8x64xbf16>
    %c0_24 = arith.constant 0 : index
    %c0_25 = arith.constant 0 : index
    %33 = vector.load %arg10[%c0_24, %c0_25] : memref<64x128xbf16, #tpu.memory_space<vmem>>, vector<64x128xbf16>
    %cst_26 = arith.constant dense<0.000000e+00> : vector<8x128xf32>
    %34 = tpu.matmul %32, %33, %cst_26 {dimension_numbers = #tpu.dot_dimension_numbers<[1], [0], [0], [1], [0, 0, 1, 1], [], []>} : vector<8x64xbf16>, vector<64x128xbf16>, vector<8x128xf32> -> vector<8x128xf32>
    %c0_27 = arith.constant 0 : index
    %c0_28 = arith.constant 0 : index
    %35 = vector.load %arg11[%c0_27, %c0_28] : memref<1x128xf32, #tpu.memory_space<vmem>>, vector<1x128xf32>
    %36 = vector.broadcast %35 : vector<1x128xf32> to vector<8x128xf32>
    %37 = arith.addf %34, %36 : vector<8x128xf32>
    %cst_29 = arith.constant 0.000000e+00 : f32
    %38 = vector.broadcast %cst_29 : f32 to vector<8x128xf32>
    %39 = arith.maximumf %37, %38 : vector<8x128xf32>
    %40 = arith.truncf %39 : vector<8x128xf32> to vector<8x128xbf16>
    %c0_30 = arith.constant 0 : index
    %c0_31 = arith.constant 0 : index
    %41 = vector.load %arg12[%c0_30, %c0_31] : memref<128x256xbf16, #tpu.memory_space<vmem>>, vector<128x256xbf16>
    %cst_32 = arith.constant dense<0.000000e+00> : vector<8x256xf32>
    %42 = tpu.matmul %40, %41, %cst_32 {dimension_numbers = #tpu.dot_dimension_numbers<[1], [0], [0], [1], [0, 0, 1, 1], [], []>} : vector<8x128xbf16>, vector<128x256xbf16>, vector<8x256xf32> -> vector<8x256xf32>
    %c0_33 = arith.constant 0 : index
    %c0_34 = arith.constant 0 : index
    %43 = vector.load %arg13[%c0_33, %c0_34] : memref<1x256xf32, #tpu.memory_space<vmem>>, vector<1x256xf32>
    %44 = vector.broadcast %43 : vector<1x256xf32> to vector<8x256xf32>
    %45 = arith.addf %42, %44 : vector<8x256xf32>
    %46 = arith.truncf %45 : vector<8x256xf32> to vector<8x256xbf16>
    %c0_35 = arith.constant 0 : index
    %c0_36 = arith.constant 0 : index
    %47 = vector.load %arg14[%c0_35, %c0_36] : memref<8x256xbf16, #tpu.memory_space<vmem>>, vector<8x256xbf16>
    tpu.vector_store %arg14[%c0_35, %c0_36], %46 {strides = array<i32>} : memref<8x256xbf16, #tpu.memory_space<vmem>>, vector<8x256xbf16>,
    return
  }
  func.func @transform_0(%arg0: i32) -> (i32, i32) {
    %c0_i32 = arith.constant 0 : i32
    %c0_i32_0 = arith.constant 0 : i32
    return %arg0, %c0_i32 : i32, i32
  }
  func.func @transform_1(%arg0: i32) -> (i32, i32) {
    %c0_i32 = arith.constant 0 : i32
    %c0_i32_0 = arith.constant 0 : i32
    %c0_i32_1 = arith.constant 0 : i32
    return %c0_i32, %c0_i32_0 : i32, i32
  }
  func.func @transform_2(%arg0: i32) -> (i32, i32) {
    %c0_i32 = arith.constant 0 : i32
    %c0_i32_0 = arith.constant 0 : i32
    %c0_i32_1 = arith.constant 0 : i32
    return %c0_i32, %c0_i32_0 : i32, i32
  }
  func.func @transform_3(%arg0: i32) -> (i32, i32) {
    %c0_i32 = arith.constant 0 : i32
    %c0_i32_0 = arith.constant 0 : i32
    %c0_i32_1 = arith.constant 0 : i32
    return %c0_i32, %c0_i32_0 : i32, i32
  }
  func.func @transform_4(%arg0: i32) -> (i32, i32) {
    %c0_i32 = arith.constant 0 : i32
    %c0_i32_0 = arith.constant 0 : i32
    %c0_i32_1 = arith.constant 0 : i32
    return %c0_i32, %c0_i32_0 : i32, i32
  }
  func.func @transform_5(%arg0: i32) -> (i32, i32) {
    %c0_i32 = arith.constant 0 : i32
    %c0_i32_0 = arith.constant 0 : i32
    %c0_i32_1 = arith.constant 0 : i32
    return %c0_i32, %c0_i32_0 : i32, i32
  }
  func.func @transform_6(%arg0: i32) -> (i32, i32) {
    %c0_i32 = arith.constant 0 : i32
    %c0_i32_0 = arith.constant 0 : i32
    %c0_i32_1 = arith.constant 0 : i32
    return %c0_i32, %c0_i32_0 : i32, i32
  }
  func.func @transform_7(%arg0: i32) -> (i32, i32) {
    %c0_i32 = arith.constant 0 : i32
    %c0_i32_0 = arith.constant 0 : i32
    %c0_i32_1 = arith.constant 0 : i32
    return %c0_i32, %c0_i32_0 : i32, i32
  }
  func.func @transform_8(%arg0: i32) -> (i32, i32) {
    %c0_i32 = arith.constant 0 : i32
    %c0_i32_0 = arith.constant 0 : i32
    %c0_i32_1 = arith.constant 0 : i32
    return %c0_i32, %c0_i32_0 : i32, i32
  }
  func.func @transform_9(%arg0: i32) -> (i32, i32) {
    %c0_i32 = arith.constant 0 : i32
    %c0_i32_0 = arith.constant 0 : i32
    %c0_i32_1 = arith.constant 0 : i32
    return %c0_i32, %c0_i32_0 : i32, i32
  }
  func.func @transform_10(%arg0: i32) -> (i32, i32) {
    %c0_i32 = arith.constant 0 : i32
    %c0_i32_0 = arith.constant 0 : i32
    %c0_i32_1 = arith.constant 0 : i32
    return %c0_i32, %c0_i32_0 : i32, i32
  }
  func.func @transform_11(%arg0: i32) -> (i32, i32) {
    %c0_i32 = arith.constant 0 : i32
    %c0_i32_0 = arith.constant 0 : i32
    %c0_i32_1 = arith.constant 0 : i32
    return %c0_i32, %c0_i32_0 : i32, i32
  }
  func.func @transform_12(%arg0: i32) -> (i32, i32) {
    %c0_i32 = arith.constant 0 : i32
    %c0_i32_0 = arith.constant 0 : i32
    %c0_i32_1 = arith.constant 0 : i32
    return %c0_i32, %c0_i32_0 : i32, i32
  }
  func.func @transform_13(%arg0: i32) -> (i32, i32) {
    %c0_i32 = arith.constant 0 : i32
    %c0_i32_0 = arith.constant 0 : i32
    return %arg0, %c0_i32 : i32, i32
  }
}

module attributes {stable_mosaic.version = 11 : i64} {
  func.func @_autoencoder_kernel(%arg0: i32, %arg1: memref<8x256xbf16, #tpu.memory_space<vmem>>, %arg2: memref<256x128xbf16, #tpu.memory_space<vmem>>, %arg3: memref<1x128xf32, #tpu.memory_space<vmem>>, %arg4: memref<128x64xbf16, #tpu.memory_space<vmem>>, %arg5: memref<1x64xf32, #tpu.memory_space<vmem>>, %arg6: memref<64x32xbf16, #tpu.memory_space<vmem>>, %arg7: memref<1x32xf32, #tpu.memory_space<vmem>>, %arg8: memref<32x64xbf16, #tpu.memory_space<vmem>>, %arg9: memref<1x64xf32, #tpu.memory_space<vmem>>, %arg10: memref<64x128xbf16, #tpu.memory_space<vmem>>, %arg11: memref<1x128xf32, #tpu.memory_space<vmem>>, %arg12: memref<128x256xbf16, #tpu.memory_space<vmem>>, %arg13: memref<1x256xf32, #tpu.memory_space<vmem>>, %arg14: memref<8x256xbf16, #tpu.memory_space<vmem>>) attributes {dimension_semantics = [#tpu.dimension_semantics<parallel>], iteration_bounds = array<i64: 1>, scalar_prefetch = 0 : i64, scratch_operands = 0 : i64, tpu.core_type = #tpu.core_type<tc>, window_params = [{transform_indices = @transform_0, window_bounds = array<i64: 8, 256>}, {pipeline_mode = #tpu.pipeline_mode<synchronous>, transform_indices = @transform_1, window_bounds = array<i64: 256, 128>}, {pipeline_mode = #tpu.pipeline_mode<synchronous>, transform_indices = @transform_2, window_bounds = array<i64: 1, 128>}, {pipeline_mode = #tpu.pipeline_mode<synchronous>, transform_indices = @transform_3, window_bounds = array<i64: 128, 64>}, {pipeline_mode = #tpu.pipeline_mode<synchronous>, transform_indices = @transform_4, window_bounds = array<i64: 1, 64>}, {pipeline_mode = #tpu.pipeline_mode<synchronous>, transform_indices = @transform_5, window_bounds = array<i64: 64, 32>}, {pipeline_mode = #tpu.pipeline_mode<synchronous>, transform_indices = @transform_6, window_bounds = array<i64: 1, 32>}, {pipeline_mode = #tpu.pipeline_mode<synchronous>, transform_indices = @transform_7, window_bounds = array<i64: 32, 64>}, {pipeline_mode = #tpu.pipeline_mode<synchronous>, transform_indices = @transform_8, window_bounds = array<i64: 1, 64>}, {pipeline_mode = #tpu.pipeline_mode<synchronous>, transform_indices = @transform_9, window_bounds = array<i64: 64, 128>}, {pipeline_mode = #tpu.pipeline_mode<synchronous>, transform_indices = @transform_10, window_bounds = array<i64: 1, 128>}, {pipeline_mode = #tpu.pipeline_mode<synchronous>, transform_indices = @transform_11, window_bounds = array<i64: 128, 256>}, {pipeline_mode = #tpu.pipeline_mode<synchronous>, transform_indices = @transform_12, window_bounds = array<i64: 1, 256>}, {transform_indices = @transform_13, window_bounds = array<i64: 8, 256>}]} {
    %c0 = arith.constant 0 : index
    %c0_0 = arith.constant 0 : index
    %0 = vector.load %arg1[%c0, %c0_0] : memref<8x256xbf16, #tpu.memory_space<vmem>>, vector<8x256xbf16>
    %c0_1 = arith.constant 0 : index
    %c0_2 = arith.constant 0 : index
    %1 = vector.load %arg2[%c0_1, %c0_2] : memref<256x128xbf16, #tpu.memory_space<vmem>>, vector<256x128xbf16>
    %cst = arith.constant dense<0.000000e+00> : vector<8x128xf32>
    %2 = tpu.matmul %0, %1, %cst {dimension_numbers = #tpu.dot_dimension_numbers<[1], [0], [0], [1], [0, 0, 1, 1], [], []>} : vector<8x256xbf16>, vector<256x128xbf16>, vector<8x128xf32> -> vector<8x128xf32>
    %c0_3 = arith.constant 0 : index
    %c0_4 = arith.constant 0 : index
    %3 = vector.load %arg3[%c0_3, %c0_4] : memref<1x128xf32, #tpu.memory_space<vmem>>, vector<1x128xf32>
    %4 = vector.broadcast %3 : vector<1x128xf32> to vector<8x128xf32>
    %5 = arith.addf %2, %4 : vector<8x128xf32>
    %cst_5 = arith.constant 0.000000e+00 : f32
    %6 = vector.broadcast %cst_5 : f32 to vector<8x128xf32>
    %7 = arith.maximumf %5, %6 : vector<8x128xf32>
    %8 = arith.truncf %7 : vector<8x128xf32> to vector<8x128xbf16>
    %c0_6 = arith.constant 0 : index
    %c0_7 = arith.constant 0 : index
    %9 = vector.load %arg4[%c0_6, %c0_7] : memref<128x64xbf16, #tpu.memory_space<vmem>>, vector<128x64xbf16>
    %cst_8 = arith.constant dense<0.000000e+00> : vector<8x64xf32>
    %10 = tpu.matmul %8, %9, %cst_8 {dimension_numbers = #tpu.dot_dimension_numbers<[1], [0], [0], [1], [0, 0, 1, 1], [], []>} : vector<8x128xbf16>, vector<128x64xbf16>, vector<8x64xf32> -> vector<8x64xf32>
    %c0_9 = arith.constant 0 : index
    %c0_10 = arith.constant 0 : index
    %11 = vector.load %arg5[%c0_9, %c0_10] : memref<1x64xf32, #tpu.memory_space<vmem>>, vector<1x64xf32>
    %12 = vector.broadcast %11 : vector<1x64xf32> to vector<8x64xf32>
    %13 = arith.addf %10, %12 : vector<8x64xf32>
    %cst_11 = arith.constant 0.000000e+00 : f32
    %14 = vector.broadcast %cst_11 : f32 to vector<8x64xf32>
    %15 = arith.maximumf %13, %14 : vector<8x64xf32>
    %16 = arith.truncf %15 : vector<8x64xf32> to vector<8x64xbf16>
    %c0_12 = arith.constant 0 : index
    %c0_13 = arith.constant 0 : index
    %17 = vector.load %arg6[%c0_12, %c0_13] : memref<64x32xbf16, #tpu.memory_space<vmem>>, vector<64x32xbf16>
    %cst_14 = arith.constant dense<0.000000e+00> : vector<8x32xf32>
    %18 = tpu.matmul %16, %17, %cst_14 {dimension_numbers = #tpu.dot_dimension_numbers<[1], [0], [0], [1], [0, 0, 1, 1], [], []>} : vector<8x64xbf16>, vector<64x32xbf16>, vector<8x32xf32> -> vector<8x32xf32>
    %c0_15 = arith.constant 0 : index
    %c0_16 = arith.constant 0 : index
    %19 = vector.load %arg7[%c0_15, %c0_16] : memref<1x32xf32, #tpu.memory_space<vmem>>, vector<1x32xf32>
    %20 = vector.broadcast %19 : vector<1x32xf32> to vector<8x32xf32>
    %21 = arith.addf %18, %20 : vector<8x32xf32>
    %cst_17 = arith.constant 0.000000e+00 : f32
    %22 = vector.broadcast %cst_17 : f32 to vector<8x32xf32>
    %23 = arith.maximumf %21, %22 : vector<8x32xf32>
    %24 = arith.truncf %23 : vector<8x32xf32> to vector<8x32xbf16>
    %c0_18 = arith.constant 0 : index
    %c0_19 = arith.constant 0 : index
    %25 = vector.load %arg8[%c0_18, %c0_19] : memref<32x64xbf16, #tpu.memory_space<vmem>>, vector<32x64xbf16>
    %cst_20 = arith.constant dense<0.000000e+00> : vector<8x64xf32>
    %26 = tpu.matmul %24, %25, %cst_20 {dimension_numbers = #tpu.dot_dimension_numbers<[1], [0], [0], [1], [0, 0, 1, 1], [], []>} : vector<8x32xbf16>, vector<32x64xbf16>, vector<8x64xf32> -> vector<8x64xf32>
    %c0_21 = arith.constant 0 : index
    %c0_22 = arith.constant 0 : index
    %27 = vector.load %arg9[%c0_21, %c0_22] : memref<1x64xf32, #tpu.memory_space<vmem>>, vector<1x64xf32>
    %28 = vector.broadcast %27 : vector<1x64xf32> to vector<8x64xf32>
    %29 = arith.addf %26, %28 : vector<8x64xf32>
    %cst_23 = arith.constant 0.000000e+00 : f32
    %30 = vector.broadcast %cst_23 : f32 to vector<8x64xf32>
    %31 = arith.maximumf %29, %30 : vector<8x64xf32>
    %32 = arith.truncf %31 : vector<8x64xf32> to vector<8x64xbf16>
    %c0_24 = arith.constant 0 : index
    %c0_25 = arith.constant 0 : index
    %33 = vector.load %arg10[%c0_24, %c0_25] : memref<64x128xbf16, #tpu.memory_space<vmem>>, vector<64x128xbf16>
    %cst_26 = arith.constant dense<0.000000e+00> : vector<8x128xf32>
    %34 = tpu.matmul %32, %33, %cst_26 {dimension_numbers = #tpu.dot_dimension_numbers<[1], [0], [0], [1], [0, 0, 1, 1], [], []>} : vector<8x64xbf16>, vector<64x128xbf16>, vector<8x128xf32> -> vector<8x128xf32>
    %c0_27 = arith.constant 0 : index
    %c0_28 = arith.constant 0 : index
    %35 = vector.load %arg11[%c0_27, %c0_28] : memref<1x128xf32, #tpu.memory_space<vmem>>, vector<1x128xf32>
    %36 = vector.broadcast %35 : vector<1x128xf32> to vector<8x128xf32>
    %37 = arith.addf %34, %36 : vector<8x128xf32>
    %cst_29 = arith.constant 0.000000e+00 : f32
    %38 = vector.broadcast %cst_29 : f32 to vector<8x128xf32>
    %39 = arith.maximumf %37, %38 : vector<8x128xf32>
    %40 = arith.truncf %39 : vector<8x128xf32> to vector<8x128xbf16>
    %c0_30 = arith.constant 0 : index
    %c0_31 = arith.constant 0 : index
    %41 = vector.load %arg12[%c0_30, %c0_31] : memref<128x256xbf16, #tpu.memory_space<vmem>>, vector<128x256xbf16>
    %cst_32 = arith.constant dense<0.000000e+00> : vector<8x256xf32>
    %42 = tpu.matmul %40, %41, %cst_32 {dimension_numbers = #tpu.dot_dimension_numbers<[1], [0], [0], [1], [0, 0, 1, 1], [], []>} : vector<8x128xbf16>, vector<128x256xbf16>, vector<8x256xf32> -> vector<8x256xf32>
    %c0_33 = arith.constant 0 : index
    %c0_34 = arith.constant 0 : index
    %43 = vector.load %arg13[%c0_33, %c0_34] : memref<1x256xf32, #tpu.memory_space<vmem>>, vector<1x256xf32>
    %44 = vector.broadcast %43 : vector<1x256xf32> to vector<8x256xf32>
    %45 = arith.addf %42, %44 : vector<8x256xf32>
    %46 = arith.truncf %45 : vector<8x256xf32> to vector<8x256xbf16>
    %c0_35 = arith.constant 0 : index
    %c0_36 = arith.constant 0 : index
    %47 = vector.load %arg14[%c0_35, %c0_36] : memref<8x256xbf16, #tpu.memory_space<vmem>>, vector<8x256xbf16>
    tpu.vector_store %arg14[%c0_35, %c0_36], %46 {strides = array<i32>} : memref<8x256xbf16, #tpu.memory_space<vmem>>, vector<8x256xbf16>,
    return
  }
  func.func @transform_0(%arg0: i32) -> (i32, i32) {
    %c0_i32 = arith.constant 0 : i32
    %c0_i32_0 = arith.constant 0 : i32
    return %arg0, %c0_i32 : i32, i32
  }
  func.func @transform_1(%arg0: i32) -> (i32, i32) {
    %c0_i32 = arith.constant 0 : i32
    %c0_i32_0 = arith.constant 0 : i32
    %c0_i32_1 = arith.constant 0 : i32
    return %c0_i32, %c0_i32_0 : i32, i32
  }
  func.func @transform_2(%arg0: i32) -> (i32, i32) {
    %c0_i32 = arith.constant 0 : i32
    %c0_i32_0 = arith.constant 0 : i32
    %c0_i32_1 = arith.constant 0 : i32
    return %c0_i32, %c0_i32_0 : i32, i32
  }
  func.func @transform_3(%arg0: i32) -> (i32, i32) {
    %c0_i32 = arith.constant 0 : i32
    %c0_i32_0 = arith.constant 0 : i32
    %c0_i32_1 = arith.constant 0 : i32
    return %c0_i32, %c0_i32_0 : i32, i32
  }
  func.func @transform_4(%arg0: i32) -> (i32, i32) {
    %c0_i32 = arith.constant 0 : i32
    %c0_i32_0 = arith.constant 0 : i32
    %c0_i32_1 = arith.constant 0 : i32
    return %c0_i32, %c0_i32_0 : i32, i32
  }
  func.func @transform_5(%arg0: i32) -> (i32, i32) {
    %c0_i32 = arith.constant 0 : i32
    %c0_i32_0 = arith.constant 0 : i32
    %c0_i32_1 = arith.constant 0 : i32
    return %c0_i32, %c0_i32_0 : i32, i32
  }
  func.func @transform_6(%arg0: i32) -> (i32, i32) {
    %c0_i32 = arith.constant 0 : i32
    %c0_i32_0 = arith.constant 0 : i32
    %c0_i32_1 = arith.constant 0 : i32
    return %c0_i32, %c0_i32_0 : i32, i32
  }
  func.func @transform_7(%arg0: i32) -> (i32, i32) {
    %c0_i32 = arith.constant 0 : i32
    %c0_i32_0 = arith.constant 0 : i32
    %c0_i32_1 = arith.constant 0 : i32
    return %c0_i32, %c0_i32_0 : i32, i32
  }
  func.func @transform_8(%arg0: i32) -> (i32, i32) {
    %c0_i32 = arith.constant 0 : i32
    %c0_i32_0 = arith.constant 0 : i32
    %c0_i32_1 = arith.constant 0 : i32
    return %c0_i32, %c0_i32_0 : i32, i32
  }
  func.func @transform_9(%arg0: i32) -> (i32, i32) {
    %c0_i32 = arith.constant 0 : i32
    %c0_i32_0 = arith.constant 0 : i32
    %c0_i32_1 = arith.constant 0 : i32
    return %c0_i32, %c0_i32_0 : i32, i32
  }
  func.func @transform_10(%arg0: i32) -> (i32, i32) {
    %c0_i32 = arith.constant 0 : i32
    %c0_i32_0 = arith.constant 0 : i32
    %c0_i32_1 = arith.constant 0 : i32
    return %c0_i32, %c0_i32_0 : i32, i32
  }
  func.func @transform_11(%arg0: i32) -> (i32, i32) {
    %c0_i32 = arith.constant 0 : i32
    %c0_i32_0 = arith.constant 0 : i32
    %c0_i32_1 = arith.constant 0 : i32
    return %c0_i32, %c0_i32_0 : i32, i32
  }
  func.func @transform_12(%arg0: i32) -> (i32, i32) {
    %c0_i32 = arith.constant 0 : i32
    %c0_i32_0 = arith.constant 0 : i32
    %c0_i32_1 = arith.constant 0 : i32
    return %c0_i32, %c0_i32_0 : i32, i32
  }
  func.func @transform_13(%arg0: i32) -> (i32, i32) {
    %c0_i32 = arith.constant 0 : i32
    %c0_i32_0 = arith.constant 0 : i32
    return %arg0, %c0_i32 : i32, i32
  }
}

</mosaic_0001>

<bundles_post_ra>
// kernel: tpu_custom_call.1
= control target key start
LH: loop header
LB: loop body
LE: loop exit
PB: predicated region body
PF: predicated region fallthrough
CT: control target
= control target key end

     0   :  { %18 = vsyncpa [#allocation3], 0  ;;  %s1488_s0 = inlined_call_operand.hbm [shape: bf16[8,256], index: 0, kind: input, shape index: {}]   ;;  %s1489_s1 = inlined_call_operand.vmem [shape: bf16[256,128], index: 1, kind: input, shape index: {}]   ;;  %s1490_s2 = inlined_call_operand.hbm [shape: f32[1,128], index: 2, kind: input, shape index: {}]   ;;  %s1491_s3 = inlined_call_operand.vmem [shape: bf16[128,64], index: 3, kind: input, shape index: {}]   ;;  %s1492_s4 = inlined_call_operand.hbm [shape: f32[1,64], index: 4, kind: input, shape index: {}]   ;;  %s1493_s5 = inlined_call_operand.vmem [shape: bf16[64,32], index: 5, kind: input, shape index: {}]   ;;  %s1494_s6 = inlined_call_operand.vmem [shape: f32[1,32], index: 6, kind: input, shape index: {}]   ;;  %s1495_s7 = inlined_call_operand.hbm [shape: bf16[32,64], index: 7, kind: input, shape index: {}]   ;;  %s1496_s8 = inlined_call_operand.vmem [shape: f32[1,64], index: 8, kind: input, shape index: {}]   ;;  %s1497_s9 = inlined_call_operand.vmem [shape: bf16[64,128], index: 9, kind: input, shape index: {}]   ;;  %s1498_s10 = inlined_call_operand.vmem [shape: f32[1,128], index: 10, kind: input, shape index: {}]   ;;  %s1499_s11 = inlined_call_operand.hbm [shape: bf16[128,256], index: 11, kind: input, shape index: {}]   ;;  %s1500_s12 = inlined_call_operand.vmem [shape: f32[1,256], index: 12, kind: input, shape index: {}]   ;;  %s1501_s13 = inlined_call_operand.hbm [shape: bf16[8,256], index: 13, kind: output, shape index: {}]  }
   0x1   :  { %19 = vsyncpa [#allocation6], 0 }
   0x2   :  { %20 = vsyncpa [#allocation9], 0 }
   0x3   :  { %21 = vsyncpa [#allocation4], 0  ;;  %s1190_s25 = smov [#allocation5]   ;;  %s1191_s27 = smov [#allocation8]  }
   0x4   :  { %s40_s26 = sshll.u32 %s1190_s25, 4  ;;  %s65_s28 = sshll.u32 %s1191_s27, 4  ;;  %s41_s26 = int_to_ptr.vmem [resolvable:$true] %s40_s26  ;;  %s1273_s28 = int_to_ptr.vmem [resolvable:$true] %s65_s28 }
   0x5   :  { %s1050_s14 = scalar_lea.hbm %s1490_s2, 16 }
   0x6   :  { %p1051_p0 = scmp.ne.s32.totalorder %s1490_s2, %s1050_s14  ;;  %p1054_p1 = scmp.lt.u32.totalorder %s1050_s14, %s1490_s2 }
   0x8   :  { %p1056_p2 = pnand %p1054_p1, %p1051_p0 }
   0xa   :  { %1059 = shalt.err (!%p1056_p2)
}
   0xb   :  { %s1060_s19 = scalar_lea.vmem %s41_s26, 16  ;;  %s1064_s20 = scalar_lea.vmem %s41_s26, 32 }
   0xc   :  { %p1061_p3 = scmp.ne.s32.totalorder %s41_s26, %s1060_s19  ;;  %p1065_p4 = scmp.lt.s32.totalorder %s41_s26, %s41_s26 }
   0xd   :  { %p1066_p5 = scmp.lt.s32.totalorder %s1064_s20, %s1060_s19 }
   0xf   :  { %p1067_p6 = por %p1066_p5, %p1065_p4 }
  0x11   :  { %p1068_p7 = pnand %p1067_p6, %p1061_p3 }
  0x13   :  { %1071 = shalt.err (!%p1068_p7)
}
  0x14   :  { %43 = dma.hbm_to_vmem [thread:$0]  %s1490_s2, 16, %s41_s26, [#allocation6]  }
  0x15   :  { %s1072_s25 = scalar_lea.hbm %s1495_s7, 256 }
  0x16   :  { %p1073_p8 = scmp.ne.s32.totalorder %s1495_s7, %s1072_s25  ;;  %p1076_p9 = scmp.lt.u32.totalorder %s1072_s25, %s1495_s7 }
  0x18   :  { %p1078_p10 = pnand %p1076_p9, %p1073_p8 }
  0x1a   :  { %1081 = shalt.err (!%p1078_p10)
}
  0x1b   :  { %s1082_s15 = scalar_lea.vmem %s1273_s28, 256  ;;  %p1087_p12 = scmp.lt.s32.totalorder %s1273_s28, %s1273_s28 }
  0x1c   :  { %p1083_p11 = scmp.ne.s32.totalorder %s1273_s28, %s1082_s15  ;;  %p1088_p13 = scmp.lt.s32.totalorder %s1082_s15, %s1082_s15 }
  0x1e   :  { %p1089_p0 = por %p1088_p13, %p1087_p12 }
  0x20   :  { %p1090_p1 = pnand %p1089_p0, %p1083_p11 }
  0x22   :  { %1093 = shalt.err (!%p1090_p1)
}
  0x23   :  { %s1192_s2 = smov 64   ;;  %s1193_s26 = smov 4  }
  0x24   :  { %71 = dma.hbm_to_vmem [thread:$0]  %s1495_s7, 256, %s1273_s28, [#allocation9], %s1192_s2, %s1192_s2, %s1193_s26  }
  0x25   :  { %s1194_s18 = smov [#allocation2]   ;;  %s1195_s20 = smov [#allocation7]  }
  0x26   :  { %s28_s19 = sshll.u32 %s1194_s18, 4  ;;  %s52_s21 = sshll.u32 %s1195_s20, 4  ;;  %s29_s19 = int_to_ptr.vmem [resolvable:$true] %s28_s19  ;;  %s53_s21 = int_to_ptr.vmem [resolvable:$true] %s52_s21 }
  0x27   :  { %s1094_s24 = scalar_lea.hbm %s1488_s0, 128 }
  0x28   :  { %p1095_p2 = scmp.ne.s32.totalorder %s1488_s0, %s1094_s24  ;;  %p1098_p3 = scmp.lt.u32.totalorder %s1094_s24, %s1488_s0 }
  0x2a   :  { %p1100_p4 = pnand %p1098_p3, %p1095_p2 }
  0x2c   :  { %1103 = shalt.err (!%p1100_p4)
}
  0x2d   :  { %s1104_s7 = scalar_lea.vmem %s29_s19, 128  ;;  %p1109_p6 = scmp.lt.s32.totalorder %s29_s19, %s29_s19 }
  0x2e   :  { %p1105_p5 = scmp.ne.s32.totalorder %s29_s19, %s1104_s7  ;;  %p1110_p7 = scmp.lt.s32.totalorder %s1104_s7, %s1104_s7 }
  0x30   :  { %p1111_p8 = por %p1110_p7, %p1109_p6 }
  0x32   :  { %p1112_p9 = pnand %p1111_p8, %p1105_p5 }
  0x34   :  { %1115 = shalt.err (!%p1112_p9)
}
  0x35   :  { %31 = dma.hbm_to_vmem [thread:$0]  %s1488_s0, 128, %s29_s19, [#allocation3]  }
  0x36   :  { %s1116_s26 = scalar_lea.hbm %s1492_s4, 16 }
  0x37   :  { %p1117_p10 = scmp.ne.s32.totalorder %s1492_s4, %s1116_s26  ;;  %p1120_p11 = scmp.lt.u32.totalorder %s1116_s26, %s1492_s4 }
  0x39   :  { %p1122_p12 = pnand %p1120_p11, %p1117_p10 }
  0x3b   :  { %1125 = shalt.err (!%p1122_p12)
}
  0x3c   :  { %s1126_s22 = scalar_lea.vmem %s53_s21, 16  ;;  %s1130_s23 = scalar_lea.vmem %s53_s21, 32 }
  0x3d   :  { %p1127_p13 = scmp.ne.s32.totalorder %s53_s21, %s1126_s22  ;;  %p1131_p0 = scmp.lt.s32.totalorder %s53_s21, %s53_s21 }
  0x3e   :  { %p1132_p1 = scmp.lt.s32.totalorder %s1130_s23, %s1126_s22 }
  0x40   :  { %p1133_p2 = por %p1132_p1, %p1131_p0 }
  0x42   :  { %p1134_p3 = pnand %p1133_p2, %p1127_p13 }
  0x44   :  { %1137 = shalt.err (!%p1134_p3)
}
  0x45   :  { %55 = dma.hbm_to_vmem [thread:$0]  %s1492_s4, 16, %s53_s21, [#allocation6]  }
  0x46   :  { %s1196_s24 = smov [#allocation10]   ;;  %s1138_s30 = scalar_lea.hbm %s1499_s11, 2048 }
  0x47   :  { %s83_s25 = sshll.u32 %s1196_s24, 4  ;;  %p1139_p4 = scmp.ne.s32.totalorder %s1499_s11, %s1138_s30  ;;  %s84_s25 = int_to_ptr.vmem [resolvable:$true] %s83_s25 }
  0x48   :  { %p1142_p5 = scmp.lt.u32.totalorder %s1138_s30, %s1499_s11 }
  0x4a   :  { %p1144_p6 = pnand %p1142_p5, %p1139_p4 }
  0x4c   :  { %1147 = shalt.err (!%p1144_p6)
}
  0x4d   :  { %s1148_s2 = scalar_lea.vmem %s84_s25, 2048  ;;  %p1153_p8 = scmp.lt.s32.totalorder %s84_s25, %s84_s25 }
  0x4e   :  { %p1149_p7 = scmp.ne.s32.totalorder %s84_s25, %s1148_s2  ;;  %p1154_p9 = scmp.lt.s32.totalorder %s1148_s2, %s1148_s2 }
  0x50   :  { %p1155_p10 = por %p1154_p9, %p1153_p8 }
  0x52   :  { %p1156_p11 = pnand %p1155_p10, %p1149_p7 }
  0x54   :  { %1159 = shalt.err (!%p1156_p11)
}
  0x55   :  { %s1197_s4 = smov 128   ;;  %s1198_s21 = smov 8  }
  0x56   :  { %89 = dma.hbm_to_vmem [thread:$0]  %s1499_s11, 2048, %s84_s25, [#allocation9], %s1197_s4, %s1197_s4, %s1198_s21  }
  0x57   :  { %1182 = dma.done.wait [#allocation3], 128  }
  0x58   :  { %1183 = vsyncadd [#allocation3], 4294967168 }
  0x59   :  { %1184 = dma.done.wait [#allocation6], 32  }
  0x5a   :  { %1185 = vsyncadd [#allocation6], 4294967264 }
  0x5b   :  { %1186 = dma.done.wait [#allocation9], 2304  }
  0x5c   :  { %1187 = vsyncadd [#allocation9], 4294964992  ;;  %v1199_v0 = vmov 0.0   ;;  %v990_v1 = vld [vmem:[%s1489_s1 + $0x40] sm:$0xff]   ;;  %v992_v3 = vld [vmem:[%s1489_s1 + $0x48] sm:$0xff]   ;;  %vm1200_vm0 = vmmov 0  }
  0x5d   :  { %925 = vmatprep.subr.bf16.mxu1 %v1199_v0  ;;  %v991_v2 = vld [vmem:[%s1489_s1] sm:$0xff]   ;;  %881 = vmatprep.subr.bf16.mxu0 %v990_v1  ;;  %v993_v4 = vld [vmem:[%s1489_s1 + $0x8] sm:$0xff]   ;;  %v994_v5 = vld [vmem:[%s1489_s1 + $0x50] sm:$0xff]   ;;  %vm445_vm1 = vcmask 523264   ;;  %vm514_vm2 = vcmask 261120  }
  0x5e   :  { %882 = vmatpush3.bf16.msra.mxu0 %v991_v2  ;;  %v995_v6 = vld [vmem:[%s1489_s1 + $0x10] sm:$0xff]   ;;  %v996_v7 = vld [vmem:[%s1489_s1 + $0x58] sm:$0xff]   ;;  %v998_v9 = vld [vmem:[%s1489_s1 + $0x60] sm:$0xff]   ;;  %941 = vmatprep.mubr.msk.bf16.mxu1 %vm1200_vm0, %v1199_v0 }
  0x5f   :  { %883 = vmatprep.subr.bf16.mxu0 %v992_v3  ;;  %v997_v8 = vld [vmem:[%s1489_s1 + $0x18] sm:$0xff]   ;;  %v999_v10 = vld [vmem:[%s1489_s1 + $0x20] sm:$0xff]   ;;  %v1000_v11 = vld [vmem:[%s1489_s1 + $0x68] sm:$0xff]  }
  0x60   :  { %v108_v12 = vld [vmem:[#allocation2] sm:$0xff]  ;;  %v1001_v15 = vld [vmem:[%s1489_s1 + $0x28] sm:$0xff]   ;;  %v1002_v16 = vld [vmem:[%s1489_s1 + $0x70] sm:$0xff]  }
  0x61   :  { %v821_v13 = vcombine.high %v108_v12, %v108_v12  ;;  %v1008_v14 = vld [vmem:[%s1491_s3] sm:$0xff]   ;;  %v1009_v17 = vld [vmem:[%s1491_s3 + $0x8] sm:$0xff]   ;;  %v1003_v18 = vld [vmem:[%s1489_s1 + $0x30] sm:$0xff]   ;;  %v820_v23 = vcombine.low %v108_v12, %v108_v12 }
  0x62   :  { %884 = vmatpush3.bf16.msra.mxu0 %v993_v4  ;;  %926 = vmatpush3.bf16.msra.mxu1 %v1008_v14  ;;  %v1004_v19 = vld [vmem:[%s1489_s1 + $0x78] sm:$0xff]   ;;  %v1010_v20 = vld [vmem:[%s1491_s3 + $0x10] sm:$0xff]   ;;  %v1012_v24 = vld [vmem:[%s1491_s3 + $0x20] sm:$0xff]  }
  0x63   :  { %885 = vmatprep.subr.bf16.mxu0 %v994_v5  ;;  %283 = vmatprep.mubr.bf16.mxu0 %v821_v13  ;;  %v1005_v21 = vld [vmem:[%s1489_s1 + $0x38] sm:$0xff]   ;;  %v1013_v25 = vld [vmem:[%s1491_s3 + $0x28] sm:$0xff]   ;;  %v1014_v26 = vld [vmem:[%s1491_s3 + $0x30] sm:$0xff]  }
  0x64   :  { %927 = vmatprep.subr.bf16.mxu1 %v1199_v0  ;;  %v1011_v22 = vld [vmem:[%s1491_s3 + $0x18] sm:$0xff]   ;;  %v819_v29 = vld [vmem:[#allocation5] ss:$0 sm:$0xff]  ;;  %v1016_v36 = vld [vmem:[%s1493_s5] sm:$0xff]  }
  0x65   :  { %v1015_v27 = vld [vmem:[%s1491_s3 + $0x38] sm:$0xff]   ;;  %v1017_v38 = vld [vmem:[%s1493_s5 + $0x8] sm:$0xff]   ;;  %v1018_v39 = vld [vmem:[%s1493_s5 + $0x10] sm:$0xff]  }
  0x66   :  { %886 = vmatpush3.bf16.msra.mxu0 %v995_v6  ;;  %928 = vmatpush3.bf16.msra.mxu1 %v1009_v17  ;;  %v1019_v40 = vld [vmem:[%s1493_s5 + $0x18] sm:$0xff]   ;;  %v838_v41 = vld [vmem:[#allocation7] ss:$0 sm:$0xff]  ;;  %v1020_v48 = vld [vmem:[#allocation8] sm:$0xff]  }
  0x67   :  { %887 = vmatprep.subr.bf16.mxu0 %v996_v7  ;;  %929 = vmatprep.subr.bf16.mxu1 %v1199_v0  ;;  %v1021_v50 = vld [vmem:[#allocation8 + $0x8] sm:$0xff]   ;;  %v847_v51 = vld [vmem:[%s1494_s6] ss:$0 sm:$0xff]  ;;  %v1023_v60 = vld [vmem:[%s1497_s9 + $0x8] sm:$0xff]  }
  0x68   :  { %v1022_v58 = vld [vmem:[%s1497_s9] sm:$0xff]   ;;  %v1024_v61 = vld [vmem:[%s1497_s9 + $0x10] sm:$0xff]   ;;  %v1025_v62 = vld [vmem:[%s1497_s9 + $0x18] sm:$0xff]  }
  0x69   :  { %v1026_v63 = vld [vmem:[#allocation10] ss:$8 sps:$4 sm:$0xff]   ;;  %v1028_v1 = vld [vmem:[#allocation10 + $0x4] ss:$8 sps:$4 sm:$0xff]   ;;  %v1031_v2 = vld [vmem:[#allocation10 + $0x14] ss:$8 sps:$4 sm:$0xff]  }
  0x6a   :  { %888 = vmatpush3.bf16.msra.mxu0 %v997_v8  ;;  %930 = vmatpush3.bf16.msra.mxu1 %v1010_v20  ;;  %v1029_v3 = vld [vmem:[#allocation10 + $0x10] ss:$8 sps:$4 sm:$0xff]   ;;  %v1034_v4 = vld [vmem:[#allocation10 + $0x24] ss:$8 sps:$4 sm:$0xff]   ;;  %v1032_v5 = vld [vmem:[#allocation10 + $0x20] ss:$8 sps:$4 sm:$0xff]  }
  0x6b   :  { %889 = vmatprep.subr.bf16.mxu0 %v998_v9  ;;  %931 = vmatprep.subr.bf16.mxu1 %v1199_v0  ;;  %v1037_v6 = vld [vmem:[#allocation10 + $0x34] ss:$8 sps:$4 sm:$0xff]   ;;  %v1035_v7 = vld [vmem:[#allocation10 + $0x30] ss:$8 sps:$4 sm:$0xff]   ;;  %v1038_v8 = vld [vmem:[#allocation10 + $0x40] ss:$8 sps:$4 sm:$0xff]  }
  0x6c   :  { %v1043_v9 = vld [vmem:[#allocation10 + $0x54] ss:$8 sps:$4 sm:$0xff]   ;;  %v1044_v12 = vld [vmem:[#allocation10 + $0x60] ss:$8 sps:$4 sm:$0xff]   ;;  %v853_v13 = vld [vmem:[%s1496_s8] ss:$0 sm:$0xff] }
  0x6e   :  { %890 = vmatpush3.bf16.msra.mxu0 %v999_v10  ;;  %932 = vmatpush3.bf16.msra.mxu1 %v1011_v22  ;;  %v1041_v10 = vld [vmem:[#allocation10 + $0x50] ss:$8 sps:$4 sm:$0xff]  }
  0x6f   :  { %891 = vmatprep.subr.bf16.mxu0 %v1000_v11  ;;  %933 = vmatprep.subr.bf16.mxu1 %v1199_v0  ;;  %v1046_v11 = vld [vmem:[#allocation10 + $0x64] ss:$8 sps:$4 sm:$0xff]   ;;  %v1047_v22 = vld [vmem:[#allocation10 + $0x70] ss:$8 sps:$4 sm:$0xff]  }
  0x72   :  { %892 = vmatpush3.bf16.msra.mxu0 %v1001_v15  ;;  %934 = vmatpush3.bf16.msra.mxu1 %v1012_v24  ;;  %v857_v24 = vld [vmem:[%s1498_s10] ss:$0 sm:$0xff]  ;;  %s1202_s10 = smov [#allocation11]  }
  0x73   :  { %893 = vmatprep.subr.bf16.mxu0 %v1002_v16  ;;  %935 = vmatprep.subr.bf16.mxu1 %v1199_v0  ;;  %s808_s16 = sshll.u32 %s1202_s10, 4  ;;  %s809_s16 = int_to_ptr.vmem [resolvable:$true] %s808_s16 }
  0x74   :  { %s1160_s17 = scalar_lea.vmem %s809_s16, 128  ;;  %p1165_p13 = scmp.lt.s32.totalorder %s809_s16, %s809_s16 }
  0x75   :  { %p1161_p12 = scmp.ne.s32.totalorder %s809_s16, %s1160_s17  ;;  %p1166_p0 = scmp.lt.s32.totalorder %s1160_s17, %s1160_s17 }
  0x76   :  { %894 = vmatpush3.bf16.msra.mxu0 %v1003_v18  ;;  %936 = vmatpush3.bf16.msra.mxu1 %v1013_v25 }
  0x77   :  { %895 = vmatprep.subr.bf16.mxu0 %v1004_v19  ;;  %937 = vmatprep.subr.bf16.mxu1 %v1199_v0  ;;  %p1167_p1 = por %p1166_p0, %p1165_p13 }
  0x79   :  { %p1168_p2 = pnand %p1167_p1, %p1161_p12 }
  0x7a   :  { %896 = vmatpush3.bf16.msra.mxu0 %v1005_v21  ;;  %938 = vmatpush3.bf16.msra.mxu1 %v1014_v26  ;;  %v1049_v21 = vld [vmem:[#allocation10 + $0x74] ss:$8 sps:$4 sm:$0xff]  }
  0x7b   :  { %939 = vmatprep.subr.bf16.mxu1 %v1199_v0  ;;  %752 = vmatprep.subr.bf16.mxu0 %v1028_v1 }
  0x7d   :  { %284 = vmatmul.mubr.bf16.vlgmr.msra.gmra.mrb[0].mxu0 %v820_v23  ;;  %v1201_v23 = vmov 0  }
  0x7e   :  { %940 = vmatpush3.bf16.msra.mxu1 %v1015_v27  ;;  %753 = vmatpush1.bf16.msra.mxu0 %v1026_v63 }
  0x7f   :  { %945 = vmatprep.subr.bf16.mxu1 %v1199_v0  ;;  %754 = vmatprep.subr.bf16.mxu0 %v1031_v2 }
  0x80   :  { %784 = vmatprep.mubr.bf16.mxu0 %v1201_v23 }
  0x82   :  { %755 = vmatpush1.bf16.msra.mxu0 %v1029_v3 }
  0x83   :  { %756 = vmatprep.subr.bf16.mxu0 %v1034_v4 }
  0x86   :  { %757 = vmatpush1.bf16.msra.mxu0 %v1032_v5 }
  0x87   :  { %758 = vmatprep.subr.bf16.mxu0 %v1037_v6 }
  0x8a   :  { %759 = vmatpush1.bf16.msra.mxu0 %v1035_v7 }
 0x150   :  { %v897_v28 = vpop.f32.mrb[0].mxu0 }
 0x151   :  { %v898_v30 = vpop.f32.mrb[1].mxu0 }
 0x152   :  { %v899_v31 = vadd.f32 %v898_v30, %v897_v28  ;;  %v900_v32 = vpop.f32.mrb[2].mxu0 }
 0x153   :  { %v901_v33 = vpop.f32.mrb[3].mxu0  ;;  %v662_v32 = vlaneseq }
 0x154   :  { %v286_v34 = vadd.f32 %v899_v31, %v819_v29 }
 0x155   :  { %v663_v33 = vshrl.u32 %v662_v32, 7 }
 0x156   :  { %v291_v35 = vmax.f32 %v286_v34, 0.0 }
 0x157   :  { %v664_v34 = vsub.s32 0, %v663_v33 }
 0x158   :  { %v292_v37 = vpack.c.bf16 %v291_v35, %v291_v35  ;;  %v660_v35 = vld [vmem:[%s1500_s12] sm:$0x3] }
 0x15a   :  { %942 = vmatmul.mubr.bf16.vlgmr.msra.gmra.mrb[0].mxu1 %v292_v37  ;;  %v665_v37 = vrot.slane %v660_v35, %v664_v34 }
 0x15b   :  { %946 = vmatpush3.bf16.msra.mxu1 %v1016_v36  ;;  %953 = vmatprep.mubr.msk.bf16.mxu1 %vm1200_vm0, %v1199_v0  ;;  %v668_v36 = vsub.s32 1, %v663_v33 }
 0x15c   :  { %947 = vmatprep.subr.bf16.mxu1 %v1199_v0 }
 0x15f   :  { %948 = vmatpush3.bf16.msra.mxu1 %v1017_v38  ;;  %v669_v38 = vrot.slane %v660_v35, %v668_v36 }
 0x160   :  { %949 = vmatprep.subr.bf16.mxu1 %v1199_v0 }
 0x163   :  { %950 = vmatpush3.bf16.msra.mxu1 %v1018_v39 }
 0x164   :  { %951 = vmatprep.subr.bf16.mxu1 %v1199_v0 }
 0x167   :  { %952 = vmatpush3.bf16.msra.mxu1 %v1019_v40 }
 0x168   :  { %957 = vmatprep.subr.bf16.mxu1 %v1199_v0 }
 0x22d   :  { %v398_v42 = vpop.f32.mrb[0].mxu1 }
 0x22e   :  { %v399_v43 = vadd.f32 %v838_v41, %v398_v42  ;;  %v943_v44 = vpop.f32.mrb[1].mxu1 }
 0x22f   :  { %v401_v45 = vpop.f32.mrb[2].mxu1 }
 0x230   :  { %v404_v46 = vmax.f32 %v399_v43, 0.0  ;;  %v944_v47 = vpop.f32.mrb[3].mxu1 }
 0x232   :  { %v405_v49 = vpack.c.bf16 %v404_v46, %v404_v46 }
 0x234   :  { %954 = vmatmul.mubr.msk.bf16.vlgmr.msra.gmra.mrb[4].mxu1 %vm445_vm1, %v405_v49 }
 0x235   :  { %958 = vmatpush3.bf16.msra.mxu1 %v1020_v48  ;;  %961 = vmatprep.mubr.msk.bf16.mxu1 %vm1200_vm0, %v1199_v0 }
 0x236   :  { %959 = vmatprep.subr.bf16.mxu1 %v1199_v0 }
 0x239   :  { %960 = vmatpush3.bf16.msra.mxu1 %v1021_v50 }
 0x23a   :  { %965 = vmatprep.subr.bf16.mxu1 %v1199_v0 }
 0x307   :  { %v483_v52 = vpop.f32.mrb[4].mxu1 }
 0x308   :  { %v484_v53 = vadd.f32 %v847_v51, %v483_v52  ;;  %v955_v54 = vpop.f32.mrb[5].mxu1 }
 0x309   :  { %v486_v55 = vpop.f32.mrb[6].mxu1 }
 0x30a   :  { %v489_v56 = vmax.f32 %v484_v53, 0.0  ;;  %v956_v57 = vpop.f32.mrb[7].mxu1 }
 0x30c   :  { %v490_v59 = vpack.c.bf16 %v489_v56, %v489_v56 }
 0x30e   :  { %962 = vmatmul.mubr.msk.bf16.vlgmr.msra.gmra.mrb[8].mxu1 %vm514_vm2, %v490_v59 }
 0x30f   :  { %966 = vmatpush3.bf16.msra.mxu1 %v1022_v58  ;;  %973 = vmatprep.mubr.msk.bf16.mxu1 %vm1200_vm0, %v1199_v0 }
 0x310   :  { %967 = vmatprep.subr.bf16.mxu1 %v1199_v0 }
 0x313   :  { %968 = vmatpush3.bf16.msra.mxu1 %v1023_v60 }
 0x314   :  { %969 = vmatprep.subr.bf16.mxu1 %v1199_v0 }
 0x317   :  { %970 = vmatpush3.bf16.msra.mxu1 %v1024_v61 }
 0x318   :  { %971 = vmatprep.subr.bf16.mxu1 %v1199_v0  ;;  %v1040_v0 = vld [vmem:[#allocation10 + $0x44] ss:$8 sps:$4 sm:$0xff]  }
 0x319   :  { %760 = vmatprep.subr.bf16.mxu0 %v1040_v0 }
 0x31a   :  { %761 = vmatpush1.bf16.msra.mxu0 %v1038_v8 }
 0x31b   :  { %972 = vmatpush3.bf16.msra.mxu1 %v1025_v62  ;;  %762 = vmatprep.subr.bf16.mxu0 %v1043_v9 }
 0x31e   :  { %763 = vmatpush1.bf16.msra.mxu0 %v1041_v10 }
 0x31f   :  { %764 = vmatprep.subr.bf16.mxu0 %v1046_v11 }
 0x322   :  { %765 = vmatpush1.bf16.msra.mxu0 %v1044_v12 }
 0x323   :  { %766 = vmatprep.subr.bf16.mxu0 %v1049_v21 }
 0x326   :  { %767 = vmatpush1.bf16.msra.mxu0 %v1047_v22 }
 0x3e1   :  { %v552_v14 = vpop.f32.mrb[8].mxu1 }
 0x3e2   :  { %v553_v15 = vadd.f32 %v853_v13, %v552_v14  ;;  %v963_v16 = vpop.f32.mrb[9].mxu1 }
 0x3e3   :  { %v555_v17 = vpop.f32.mrb[10].mxu1 }
 0x3e4   :  { %v558_v18 = vmax.f32 %v553_v15, 0.0  ;;  %v964_v19 = vpop.f32.mrb[11].mxu1 }
 0x3e6   :  { %v559_v20 = vpack.c.bf16 %v558_v18, %v558_v18 }
 0x3e8   :  { %974 = vmatmul.mubr.msk.bf16.vlgmr.msra.gmra.mrb[12].mxu1 %vm445_vm1, %v559_v20 }
 0x4bb   :  { %v636_v25 = vpop.f32.mrb[12].mxu1 }
 0x4bc   :  { %v637_v26 = vadd.f32 %v857_v24, %v636_v25  ;;  %v975_v27 = vpop.f32.mrb[13].mxu1 }
 0x4bd   :  { %v639_v28 = vpop.f32.mrb[14].mxu1 }
 0x4be   :  { %v642_v29 = vmax.f32 %v637_v26, 0.0  ;;  %v976_v30 = vpop.f32.mrb[15].mxu1 }
 0x4c0   :  { %v643_v31 = vpack.c.bf16 %v642_v29, %v642_v29 }
 0x4c2   :  { %785 = vmatmul.mubr.bf16.vlgmr.msra.gmra.mrb[4].mxu0 %v643_v31 }
 0x595   :  { %v786_v39 = vpop.f32.mrb[4].mxu0 }
 0x596   :  { %v787_v40 = vadd.f32 %v786_v39, %v665_v37  ;;  %v788_v41 = vpop.f32.mrb[5].mxu0 }
 0x597   :  { %v789_v42 = vadd.f32 %v788_v41, %v669_v38  ;;  %v790_v43 = vpop.f32.mrb[6].mxu0 }
 0x598   :  { %v791_v44 = vpop.f32.mrb[7].mxu0 }
 0x599   :  { %v880_v45 = vpack.c.bf16 %v789_v42, %v787_v40 }
 0x59b   :  { %801 = vst [vmem:[#allocation11] sm:$0xff] %v880_v45 }
 0x59c   :  { %1171 = shalt.err (!%p1168_p2)
}
 0x59d   :  { %s1172_s20 = scalar_lea.hbm %s1501_s13, 128 }
 0x59e   :  { %p1173_p3 = scmp.ne.s32.totalorder %s1501_s13, %s1172_s20  ;;  %p1176_p4 = scmp.lt.u32.totalorder %s1172_s20, %s1501_s13 }
 0x5a0   :  { %p1178_p5 = pnand %p1176_p4, %p1173_p3 }
 0x5a2   :  { %1181 = shalt.err (!%p1178_p5)
}
 0x5a3   :  { %811 = dma.vmem_to_hbm [thread:$0]  %s809_s16, 128, %s1501_s13, [#allocation4]  }
 0x5a4   :  { %1188 = dma.done.wait [#allocation4], 128  }
 0x5a5   :  { %1189 = vsyncadd [#allocation4], 4294967168 }
 0x5a6   :  { %815 = vsyncpa [#allocation3], 1 }
 0x5a7   :  { %816 = vsyncpa [#allocation6], 1 }
 0x5a8   :  { %817 = vsyncpa [#allocation9], 1 }
 0x5a9   :  { %818 = vsyncpa [#allocation4], 1 }

// kernel: tpu_custom_call.1
= control target key start
LH: loop header
LB: loop body
LE: loop exit
PB: predicated region body
PF: predicated region fallthrough
CT: control target
= control target key end

     0   :  { %18 = vsyncpa [#allocation3], 0  ;;  %s1488_s0 = inlined_call_operand.hbm [shape: bf16[8,256], index: 0, kind: input, shape index: {}]   ;;  %s1489_s1 = inlined_call_operand.vmem [shape: bf16[256,128], index: 1, kind: input, shape index: {}]   ;;  %s1490_s2 = inlined_call_operand.hbm [shape: f32[1,128], index: 2, kind: input, shape index: {}]   ;;  %s1491_s3 = inlined_call_operand.vmem [shape: bf16[128,64], index: 3, kind: input, shape index: {}]   ;;  %s1492_s4 = inlined_call_operand.hbm [shape: f32[1,64], index: 4, kind: input, shape index: {}]   ;;  %s1493_s5 = inlined_call_operand.vmem [shape: bf16[64,32], index: 5, kind: input, shape index: {}]   ;;  %s1494_s6 = inlined_call_operand.vmem [shape: f32[1,32], index: 6, kind: input, shape index: {}]   ;;  %s1495_s7 = inlined_call_operand.hbm [shape: bf16[32,64], index: 7, kind: input, shape index: {}]   ;;  %s1496_s8 = inlined_call_operand.vmem [shape: f32[1,64], index: 8, kind: input, shape index: {}]   ;;  %s1497_s9 = inlined_call_operand.vmem [shape: bf16[64,128], index: 9, kind: input, shape index: {}]   ;;  %s1498_s10 = inlined_call_operand.vmem [shape: f32[1,128], index: 10, kind: input, shape index: {}]   ;;  %s1499_s11 = inlined_call_operand.hbm [shape: bf16[128,256], index: 11, kind: input, shape index: {}]   ;;  %s1500_s12 = inlined_call_operand.vmem [shape: f32[1,256], index: 12, kind: input, shape index: {}]   ;;  %s1501_s13 = inlined_call_operand.hbm [shape: bf16[8,256], index: 13, kind: output, shape index: {}]  }
   0x1   :  { %19 = vsyncpa [#allocation6], 0 }
   0x2   :  { %20 = vsyncpa [#allocation9], 0 }
   0x3   :  { %21 = vsyncpa [#allocation4], 0  ;;  %s1190_s25 = smov [#allocation5]   ;;  %s1191_s27 = smov [#allocation8]  }
   0x4   :  { %s40_s26 = sshll.u32 %s1190_s25, 4  ;;  %s65_s28 = sshll.u32 %s1191_s27, 4  ;;  %s41_s26 = int_to_ptr.vmem [resolvable:$true] %s40_s26  ;;  %s1273_s28 = int_to_ptr.vmem [resolvable:$true] %s65_s28 }
   0x5   :  { %s1050_s14 = scalar_lea.hbm %s1490_s2, 16 }
   0x6   :  { %p1051_p0 = scmp.ne.s32.totalorder %s1490_s2, %s1050_s14  ;;  %p1054_p1 = scmp.lt.u32.totalorder %s1050_s14, %s1490_s2 }
   0x8   :  { %p1056_p2 = pnand %p1054_p1, %p1051_p0 }
   0xa   :  { %1059 = shalt.err (!%p1056_p2)
}
   0xb   :  { %s1060_s19 = scalar_lea.vmem %s41_s26, 16  ;;  %s1064_s20 = scalar_lea.vmem %s41_s26, 32 }
   0xc   :  { %p1061_p3 = scmp.ne.s32.totalorder %s41_s26, %s1060_s19  ;;  %p1065_p4 = scmp.lt.s32.totalorder %s41_s26, %s41_s26 }
   0xd   :  { %p1066_p5 = scmp.lt.s32.totalorder %s1064_s20, %s1060_s19 }
   0xf   :  { %p1067_p6 = por %p1066_p5, %p1065_p4 }
  0x11   :  { %p1068_p7 = pnand %p1067_p6, %p1061_p3 }
  0x13   :  { %1071 = shalt.err (!%p1068_p7)
}
  0x14   :  { %43 = dma.hbm_to_vmem [thread:$0]  %s1490_s2, 16, %s41_s26, [#allocation6]  }
  0x15   :  { %s1072_s25 = scalar_lea.hbm %s1495_s7, 256 }
  0x16   :  { %p1073_p8 = scmp.ne.s32.totalorder %s1495_s7, %s1072_s25  ;;  %p1076_p9 = scmp.lt.u32.totalorder %s1072_s25, %s1495_s7 }
  0x18   :  { %p1078_p10 = pnand %p1076_p9, %p1073_p8 }
  0x1a   :  { %1081 = shalt.err (!%p1078_p10)
}
  0x1b   :  { %s1082_s15 = scalar_lea.vmem %s1273_s28, 256  ;;  %p1087_p12 = scmp.lt.s32.totalorder %s1273_s28, %s1273_s28 }
  0x1c   :  { %p1083_p11 = scmp.ne.s32.totalorder %s1273_s28, %s1082_s15  ;;  %p1088_p13 = scmp.lt.s32.totalorder %s1082_s15, %s1082_s15 }
  0x1e   :  { %p1089_p0 = por %p1088_p13, %p1087_p12 }
  0x20   :  { %p1090_p1 = pnand %p1089_p0, %p1083_p11 }
  0x22   :  { %1093 = shalt.err (!%p1090_p1)
}
  0x23   :  { %s1192_s2 = smov 64   ;;  %s1193_s26 = smov 4  }
  0x24   :  { %71 = dma.hbm_to_vmem [thread:$0]  %s1495_s7, 256, %s1273_s28, [#allocation9], %s1192_s2, %s1192_s2, %s1193_s26  }
  0x25   :  { %s1194_s18 = smov [#allocation2]   ;;  %s1195_s20 = smov [#allocation7]  }
  0x26   :  { %s28_s19 = sshll.u32 %s1194_s18, 4  ;;  %s52_s21 = sshll.u32 %s1195_s20, 4  ;;  %s29_s19 = int_to_ptr.vmem [resolvable:$true] %s28_s19  ;;  %s53_s21 = int_to_ptr.vmem [resolvable:$true] %s52_s21 }
  0x27   :  { %s1094_s24 = scalar_lea.hbm %s1488_s0, 128 }
  0x28   :  { %p1095_p2 = scmp.ne.s32.totalorder %s1488_s0, %s1094_s24  ;;  %p1098_p3 = scmp.lt.u32.totalorder %s1094_s24, %s1488_s0 }
  0x2a   :  { %p1100_p4 = pnand %p1098_p3, %p1095_p2 }
  0x2c   :  { %1103 = shalt.err (!%p1100_p4)
}
  0x2d   :  { %s1104_s7 = scalar_lea.vmem %s29_s19, 128  ;;  %p1109_p6 = scmp.lt.s32.totalorder %s29_s19, %s29_s19 }
  0x2e   :  { %p1105_p5 = scmp.ne.s32.totalorder %s29_s19, %s1104_s7  ;;  %p1110_p7 = scmp.lt.s32.totalorder %s1104_s7, %s1104_s7 }
  0x30   :  { %p1111_p8 = por %p1110_p7, %p1109_p6 }
  0x32   :  { %p1112_p9 = pnand %p1111_p8, %p1105_p5 }
  0x34   :  { %1115 = shalt.err (!%p1112_p9)
}
  0x35   :  { %31 = dma.hbm_to_vmem [thread:$0]  %s1488_s0, 128, %s29_s19, [#allocation3]  }
  0x36   :  { %s1116_s26 = scalar_lea.hbm %s1492_s4, 16 }
  0x37   :  { %p1117_p10 = scmp.ne.s32.totalorder %s1492_s4, %s1116_s26  ;;  %p1120_p11 = scmp.lt.u32.totalorder %s1116_s26, %s1492_s4 }
  0x39   :  { %p1122_p12 = pnand %p1120_p11, %p1117_p10 }
  0x3b   :  { %1125 = shalt.err (!%p1122_p12)
}
  0x3c   :  { %s1126_s22 = scalar_lea.vmem %s53_s21, 16  ;;  %s1130_s23 = scalar_lea.vmem %s53_s21, 32 }
  0x3d   :  { %p1127_p13 = scmp.ne.s32.totalorder %s53_s21, %s1126_s22  ;;  %p1131_p0 = scmp.lt.s32.totalorder %s53_s21, %s53_s21 }
  0x3e   :  { %p1132_p1 = scmp.lt.s32.totalorder %s1130_s23, %s1126_s22 }
  0x40   :  { %p1133_p2 = por %p1132_p1, %p1131_p0 }
  0x42   :  { %p1134_p3 = pnand %p1133_p2, %p1127_p13 }
  0x44   :  { %1137 = shalt.err (!%p1134_p3)
}
  0x45   :  { %55 = dma.hbm_to_vmem [thread:$0]  %s1492_s4, 16, %s53_s21, [#allocation6]  }
  0x46   :  { %s1196_s24 = smov [#allocation10]   ;;  %s1138_s30 = scalar_lea.hbm %s1499_s11, 2048 }
  0x47   :  { %s83_s25 = sshll.u32 %s1196_s24, 4  ;;  %p1139_p4 = scmp.ne.s32.totalorder %s1499_s11, %s1138_s30  ;;  %s84_s25 = int_to_ptr.vmem [resolvable:$true] %s83_s25 }
  0x48   :  { %p1142_p5 = scmp.lt.u32.totalorder %s1138_s30, %s1499_s11 }
  0x4a   :  { %p1144_p6 = pnand %p1142_p5, %p1139_p4 }
  0x4c   :  { %1147 = shalt.err (!%p1144_p6)
}
  0x4d   :  { %s1148_s2 = scalar_lea.vmem %s84_s25, 2048  ;;  %p1153_p8 = scmp.lt.s32.totalorder %s84_s25, %s84_s25 }
  0x4e   :  { %p1149_p7 = scmp.ne.s32.totalorder %s84_s25, %s1148_s2  ;;  %p1154_p9 = scmp.lt.s32.totalorder %s1148_s2, %s1148_s2 }
  0x50   :  { %p1155_p10 = por %p1154_p9, %p1153_p8 }
  0x52   :  { %p1156_p11 = pnand %p1155_p10, %p1149_p7 }
  0x54   :  { %1159 = shalt.err (!%p1156_p11)
}
  0x55   :  { %s1197_s4 = smov 128   ;;  %s1198_s21 = smov 8  }
  0x56   :  { %89 = dma.hbm_to_vmem [thread:$0]  %s1499_s11, 2048, %s84_s25, [#allocation9], %s1197_s4, %s1197_s4, %s1198_s21  }
  0x57   :  { %1182 = dma.done.wait [#allocation3], 128  }
  0x58   :  { %1183 = vsyncadd [#allocation3], 4294967168 }
  0x59   :  { %1184 = dma.done.wait [#allocation6], 32  }
  0x5a   :  { %1185 = vsyncadd [#allocation6], 4294967264 }
  0x5b   :  { %1186 = dma.done.wait [#allocation9], 2304  }
  0x5c   :  { %1187 = vsyncadd [#allocation9], 4294964992  ;;  %v1199_v0 = vmov 0.0   ;;  %v990_v1 = vld [vmem:[%s1489_s1 + $0x40] sm:$0xff]   ;;  %v992_v3 = vld [vmem:[%s1489_s1 + $0x48] sm:$0xff]   ;;  %vm1200_vm0 = vmmov 0  }
  0x5d   :  { %925 = vmatprep.subr.bf16.mxu1 %v1199_v0  ;;  %v991_v2 = vld [vmem:[%s1489_s1] sm:$0xff]   ;;  %881 = vmatprep.subr.bf16.mxu0 %v990_v1  ;;  %v993_v4 = vld [vmem:[%s1489_s1 + $0x8] sm:$0xff]   ;;  %v994_v5 = vld [vmem:[%s1489_s1 + $0x50] sm:$0xff]   ;;  %vm445_vm1 = vcmask 523264   ;;  %vm514_vm2 = vcmask 261120  }
  0x5e   :  { %882 = vmatpush3.bf16.msra.mxu0 %v991_v2  ;;  %v995_v6 = vld [vmem:[%s1489_s1 + $0x10] sm:$0xff]   ;;  %v996_v7 = vld [vmem:[%s1489_s1 + $0x58] sm:$0xff]   ;;  %v998_v9 = vld [vmem:[%s1489_s1 + $0x60] sm:$0xff]   ;;  %941 = vmatprep.mubr.msk.bf16.mxu1 %vm1200_vm0, %v1199_v0 }
  0x5f   :  { %883 = vmatprep.subr.bf16.mxu0 %v992_v3  ;;  %v997_v8 = vld [vmem:[%s1489_s1 + $0x18] sm:$0xff]   ;;  %v999_v10 = vld [vmem:[%s1489_s1 + $0x20] sm:$0xff]   ;;  %v1000_v11 = vld [vmem:[%s1489_s1 + $0x68] sm:$0xff]  }
  0x60   :  { %v108_v12 = vld [vmem:[#allocation2] sm:$0xff]  ;;  %v1001_v15 = vld [vmem:[%s1489_s1 + $0x28] sm:$0xff]   ;;  %v1002_v16 = vld [vmem:[%s1489_s1 + $0x70] sm:$0xff]  }
  0x61   :  { %v821_v13 = vcombine.high %v108_v12, %v108_v12  ;;  %v1008_v14 = vld [vmem:[%s1491_s3] sm:$0xff]   ;;  %v1009_v17 = vld [vmem:[%s1491_s3 + $0x8] sm:$0xff]   ;;  %v1003_v18 = vld [vmem:[%s1489_s1 + $0x30] sm:$0xff]   ;;  %v820_v23 = vcombine.low %v108_v12, %v108_v12 }
  0x62   :  { %884 = vmatpush3.bf16.msra.mxu0 %v993_v4  ;;  %926 = vmatpush3.bf16.msra.mxu1 %v1008_v14  ;;  %v1004_v19 = vld [vmem:[%s1489_s1 + $0x78] sm:$0xff]   ;;  %v1010_v20 = vld [vmem:[%s1491_s3 + $0x10] sm:$0xff]   ;;  %v1012_v24 = vld [vmem:[%s1491_s3 + $0x20] sm:$0xff]  }
  0x63   :  { %885 = vmatprep.subr.bf16.mxu0 %v994_v5  ;;  %283 = vmatprep.mubr.bf16.mxu0 %v821_v13  ;;  %v1005_v21 = vld [vmem:[%s1489_s1 + $0x38] sm:$0xff]   ;;  %v1013_v25 = vld [vmem:[%s1491_s3 + $0x28] sm:$0xff]   ;;  %v1014_v26 = vld [vmem:[%s1491_s3 + $0x30] sm:$0xff]  }
  0x64   :  { %927 = vmatprep.subr.bf16.mxu1 %v1199_v0  ;;  %v1011_v22 = vld [vmem:[%s1491_s3 + $0x18] sm:$0xff]   ;;  %v819_v29 = vld [vmem:[#allocation5] ss:$0 sm:$0xff]  ;;  %v1016_v36 = vld [vmem:[%s1493_s5] sm:$0xff]  }
  0x65   :  { %v1015_v27 = vld [vmem:[%s1491_s3 + $0x38] sm:$0xff]   ;;  %v1017_v38 = vld [vmem:[%s1493_s5 + $0x8] sm:$0xff]   ;;  %v1018_v39 = vld [vmem:[%s1493_s5 + $0x10] sm:$0xff]  }
  0x66   :  { %886 = vmatpush3.bf16.msra.mxu0 %v995_v6  ;;  %928 = vmatpush3.bf16.msra.mxu1 %v1009_v17  ;;  %v1019_v40 = vld [vmem:[%s1493_s5 + $0x18] sm:$0xff]   ;;  %v838_v41 = vld [vmem:[#allocation7] ss:$0 sm:$0xff]  ;;  %v1020_v48 = vld [vmem:[#allocation8] sm:$0xff]  }
  0x67   :  { %887 = vmatprep.subr.bf16.mxu0 %v996_v7  ;;  %929 = vmatprep.subr.bf16.mxu1 %v1199_v0  ;;  %v1021_v50 = vld [vmem:[#allocation8 + $0x8] sm:$0xff]   ;;  %v847_v51 = vld [vmem:[%s1494_s6] ss:$0 sm:$0xff]  ;;  %v1023_v60 = vld [vmem:[%s1497_s9 + $0x8] sm:$0xff]  }
  0x68   :  { %v1022_v58 = vld [vmem:[%s1497_s9] sm:$0xff]   ;;  %v1024_v61 = vld [vmem:[%s1497_s9 + $0x10] sm:$0xff]   ;;  %v1025_v62 = vld [vmem:[%s1497_s9 + $0x18] sm:$0xff]  }
  0x69   :  { %v1026_v63 = vld [vmem:[#allocation10] ss:$8 sps:$4 sm:$0xff]   ;;  %v1028_v1 = vld [vmem:[#allocation10 + $0x4] ss:$8 sps:$4 sm:$0xff]   ;;  %v1031_v2 = vld [vmem:[#allocation10 + $0x14] ss:$8 sps:$4 sm:$0xff]  }
  0x6a   :  { %888 = vmatpush3.bf16.msra.mxu0 %v997_v8  ;;  %930 = vmatpush3.bf16.msra.mxu1 %v1010_v20  ;;  %v1029_v3 = vld [vmem:[#allocation10 + $0x10] ss:$8 sps:$4 sm:$0xff]   ;;  %v1034_v4 = vld [vmem:[#allocation10 + $0x24] ss:$8 sps:$4 sm:$0xff]   ;;  %v1032_v5 = vld [vmem:[#allocation10 + $0x20] ss:$8 sps:$4 sm:$0xff]  }
  0x6b   :  { %889 = vmatprep.subr.bf16.mxu0 %v998_v9  ;;  %931 = vmatprep.subr.bf16.mxu1 %v1199_v0  ;;  %v1037_v6 = vld [vmem:[#allocation10 + $0x34] ss:$8 sps:$4 sm:$0xff]   ;;  %v1035_v7 = vld [vmem:[#allocation10 + $0x30] ss:$8 sps:$4 sm:$0xff]   ;;  %v1038_v8 = vld [vmem:[#allocation10 + $0x40] ss:$8 sps:$4 sm:$0xff]  }
  0x6c   :  { %v1043_v9 = vld [vmem:[#allocation10 + $0x54] ss:$8 sps:$4 sm:$0xff]   ;;  %v1044_v12 = vld [vmem:[#allocation10 + $0x60] ss:$8 sps:$4 sm:$0xff]   ;;  %v853_v13 = vld [vmem:[%s1496_s8] ss:$0 sm:$0xff] }
  0x6e   :  { %890 = vmatpush3.bf16.msra.mxu0 %v999_v10  ;;  %932 = vmatpush3.bf16.msra.mxu1 %v1011_v22  ;;  %v1041_v10 = vld [vmem:[#allocation10 + $0x50] ss:$8 sps:$4 sm:$0xff]  }
  0x6f   :  { %891 = vmatprep.subr.bf16.mxu0 %v1000_v11  ;;  %933 = vmatprep.subr.bf16.mxu1 %v1199_v0  ;;  %v1046_v11 = vld [vmem:[#allocation10 + $0x64] ss:$8 sps:$4 sm:$0xff]   ;;  %v1047_v22 = vld [vmem:[#allocation10 + $0x70] ss:$8 sps:$4 sm:$0xff]  }
  0x72   :  { %892 = vmatpush3.bf16.msra.mxu0 %v1001_v15  ;;  %934 = vmatpush3.bf16.msra.mxu1 %v1012_v24  ;;  %v857_v24 = vld [vmem:[%s1498_s10] ss:$0 sm:$0xff]  ;;  %s1202_s10 = smov [#allocation11]  }
  0x73   :  { %893 = vmatprep.subr.bf16.mxu0 %v1002_v16  ;;  %935 = vmatprep.subr.bf16.mxu1 %v1199_v0  ;;  %s808_s16 = sshll.u32 %s1202_s10, 4  ;;  %s809_s16 = int_to_ptr.vmem [resolvable:$true] %s808_s16 }
  0x74   :  { %s1160_s17 = scalar_lea.vmem %s809_s16, 128  ;;  %p1165_p13 = scmp.lt.s32.totalorder %s809_s16, %s809_s16 }
  0x75   :  { %p1161_p12 = scmp.ne.s32.totalorder %s809_s16, %s1160_s17  ;;  %p1166_p0 = scmp.lt.s32.totalorder %s1160_s17, %s1160_s17 }
  0x76   :  { %894 = vmatpush3.bf16.msra.mxu0 %v1003_v18  ;;  %936 = vmatpush3.bf16.msra.mxu1 %v1013_v25 }
  0x77   :  { %895 = vmatprep.subr.bf16.mxu0 %v1004_v19  ;;  %937 = vmatprep.subr.bf16.mxu1 %v1199_v0  ;;  %p1167_p1 = por %p1166_p0, %p1165_p13 }
  0x79   :  { %p1168_p2 = pnand %p1167_p1, %p1161_p12 }
  0x7a   :  { %896 = vmatpush3.bf16.msra.mxu0 %v1005_v21  ;;  %938 = vmatpush3.bf16.msra.mxu1 %v1014_v26  ;;  %v1049_v21 = vld [vmem:[#allocation10 + $0x74] ss:$8 sps:$4 sm:$0xff]  }
  0x7b   :  { %939 = vmatprep.subr.bf16.mxu1 %v1199_v0  ;;  %752 = vmatprep.subr.bf16.mxu0 %v1028_v1 }
  0x7d   :  { %284 = vmatmul.mubr.bf16.vlgmr.msra.gmra.mrb[0].mxu0 %v820_v23  ;;  %v1201_v23 = vmov 0  }
  0x7e   :  { %940 = vmatpush3.bf16.msra.mxu1 %v1015_v27  ;;  %753 = vmatpush1.bf16.msra.mxu0 %v1026_v63 }
  0x7f   :  { %945 = vmatprep.subr.bf16.mxu1 %v1199_v0  ;;  %754 = vmatprep.subr.bf16.mxu0 %v1031_v2 }
  0x80   :  { %784 = vmatprep.mubr.bf16.mxu0 %v1201_v23 }
  0x82   :  { %755 = vmatpush1.bf16.msra.mxu0 %v1029_v3 }
  0x83   :  { %756 = vmatprep.subr.bf16.mxu0 %v1034_v4 }
  0x86   :  { %757 = vmatpush1.bf16.msra.mxu0 %v1032_v5 }
  0x87   :  { %758 = vmatprep.subr.bf16.mxu0 %v1037_v6 }
  0x8a   :  { %759 = vmatpush1.bf16.msra.mxu0 %v1035_v7 }
 0x150   :  { %v897_v28 = vpop.f32.mrb[0].mxu0 }
 0x151   :  { %v898_v30 = vpop.f32.mrb[1].mxu0 }
 0x152   :  { %v899_v31 = vadd.f32 %v898_v30, %v897_v28  ;;  %v900_v32 = vpop.f32.mrb[2].mxu0 }
 0x153   :  { %v901_v33 = vpop.f32.mrb[3].mxu0  ;;  %v662_v32 = vlaneseq }
 0x154   :  { %v286_v34 = vadd.f32 %v899_v31, %v819_v29 }
 0x155   :  { %v663_v33 = vshrl.u32 %v662_v32, 7 }
 0x156   :  { %v291_v35 = vmax.f32 %v286_v34, 0.0 }
 0x157   :  { %v664_v34 = vsub.s32 0, %v663_v33 }
 0x158   :  { %v292_v37 = vpack.c.bf16 %v291_v35, %v291_v35  ;;  %v660_v35 = vld [vmem:[%s1500_s12] sm:$0x3] }
 0x15a   :  { %942 = vmatmul.mubr.bf16.vlgmr.msra.gmra.mrb[0].mxu1 %v292_v37  ;;  %v665_v37 = vrot.slane %v660_v35, %v664_v34 }
 0x15b   :  { %946 = vmatpush3.bf16.msra.mxu1 %v1016_v36  ;;  %953 = vmatprep.mubr.msk.bf16.mxu1 %vm1200_vm0, %v1199_v0  ;;  %v668_v36 = vsub.s32 1, %v663_v33 }
 0x15c   :  { %947 = vmatprep.subr.bf16.mxu1 %v1199_v0 }
 0x15f   :  { %948 = vmatpush3.bf16.msra.mxu1 %v1017_v38  ;;  %v669_v38 = vrot.slane %v660_v35, %v668_v36 }
 0x160   :  { %949 = vmatprep.subr.bf16.mxu1 %v1199_v0 }
 0x163   :  { %950 = vmatpush3.bf16.msra.mxu1 %v1018_v39 }
 0x164   :  { %951 = vmatprep.subr.bf16.mxu1 %v1199_v0 }
 0x167   :  { %952 = vmatpush3.bf16.msra.mxu1 %v1019_v40 }
 0x168   :  { %957 = vmatprep.subr.bf16.mxu1 %v1199_v0 }
 0x22d   :  { %v398_v42 = vpop.f32.mrb[0].mxu1 }
 0x22e   :  { %v399_v43 = vadd.f32 %v838_v41, %v398_v42  ;;  %v943_v44 = vpop.f32.mrb[1].mxu1 }
 0x22f   :  { %v401_v45 = vpop.f32.mrb[2].mxu1 }
 0x230   :  { %v404_v46 = vmax.f32 %v399_v43, 0.0  ;;  %v944_v47 = vpop.f32.mrb[3].mxu1 }
 0x232   :  { %v405_v49 = vpack.c.bf16 %v404_v46, %v404_v46 }
 0x234   :  { %954 = vmatmul.mubr.msk.bf16.vlgmr.msra.gmra.mrb[4].mxu1 %vm445_vm1, %v405_v49 }
 0x235   :  { %958 = vmatpush3.bf16.msra.mxu1 %v1020_v48  ;;  %961 = vmatprep.mubr.msk.bf16.mxu1 %vm1200_vm0, %v1199_v0 }
 0x236   :  { %959 = vmatprep.subr.bf16.mxu1 %v1199_v0 }
 0x239   :  { %960 = vmatpush3.bf16.msra.mxu1 %v1021_v50 }
 0x23a   :  { %965 = vmatprep.subr.bf16.mxu1 %v1199_v0 }
 0x307   :  { %v483_v52 = vpop.f32.mrb[4].mxu1 }
 0x308   :  { %v484_v53 = vadd.f32 %v847_v51, %v483_v52  ;;  %v955_v54 = vpop.f32.mrb[5].mxu1 }
 0x309   :  { %v486_v55 = vpop.f32.mrb[6].mxu1 }
 0x30a   :  { %v489_v56 = vmax.f32 %v484_v53, 0.0  ;;  %v956_v57 = vpop.f32.mrb[7].mxu1 }
 0x30c   :  { %v490_v59 = vpack.c.bf16 %v489_v56, %v489_v56 }
 0x30e   :  { %962 = vmatmul.mubr.msk.bf16.vlgmr.msra.gmra.mrb[8].mxu1 %vm514_vm2, %v490_v59 }
 0x30f   :  { %966 = vmatpush3.bf16.msra.mxu1 %v1022_v58  ;;  %973 = vmatprep.mubr.msk.bf16.mxu1 %vm1200_vm0, %v1199_v0 }
 0x310   :  { %967 = vmatprep.subr.bf16.mxu1 %v1199_v0 }
 0x313   :  { %968 = vmatpush3.bf16.msra.mxu1 %v1023_v60 }
 0x314   :  { %969 = vmatprep.subr.bf16.mxu1 %v1199_v0 }
 0x317   :  { %970 = vmatpush3.bf16.msra.mxu1 %v1024_v61 }
 0x318   :  { %971 = vmatprep.subr.bf16.mxu1 %v1199_v0  ;;  %v1040_v0 = vld [vmem:[#allocation10 + $0x44] ss:$8 sps:$4 sm:$0xff]  }
 0x319   :  { %760 = vmatprep.subr.bf16.mxu0 %v1040_v0 }
 0x31a   :  { %761 = vmatpush1.bf16.msra.mxu0 %v1038_v8 }
 0x31b   :  { %972 = vmatpush3.bf16.msra.mxu1 %v1025_v62  ;;  %762 = vmatprep.subr.bf16.mxu0 %v1043_v9 }
 0x31e   :  { %763 = vmatpush1.bf16.msra.mxu0 %v1041_v10 }
 0x31f   :  { %764 = vmatprep.subr.bf16.mxu0 %v1046_v11 }
 0x322   :  { %765 = vmatpush1.bf16.msra.mxu0 %v1044_v12 }
 0x323   :  { %766 = vmatprep.subr.bf16.mxu0 %v1049_v21 }
 0x326   :  { %767 = vmatpush1.bf16.msra.mxu0 %v1047_v22 }
 0x3e1   :  { %v552_v14 = vpop.f32.mrb[8].mxu1 }
 0x3e2   :  { %v553_v15 = vadd.f32 %v853_v13, %v552_v14  ;;  %v963_v16 = vpop.f32.mrb[9].mxu1 }
 0x3e3   :  { %v555_v17 = vpop.f32.mrb[10].mxu1 }
 0x3e4   :  { %v558_v18 = vmax.f32 %v553_v15, 0.0  ;;  %v964_v19 = vpop.f32.mrb[11].mxu1 }
 0x3e6   :  { %v559_v20 = vpack.c.bf16 %v558_v18, %v558_v18 }
 0x3e8   :  { %974 = vmatmul.mubr.msk.bf16.vlgmr.msra.gmra.mrb[12].mxu1 %vm445_vm1, %v559_v20 }
 0x4bb   :  { %v636_v25 = vpop.f32.mrb[12].mxu1 }
 0x4bc   :  { %v637_v26 = vadd.f32 %v857_v24, %v636_v25  ;;  %v975_v27 = vpop.f32.mrb[13].mxu1 }
 0x4bd   :  { %v639_v28 = vpop.f32.mrb[14].mxu1 }
 0x4be   :  { %v642_v29 = vmax.f32 %v637_v26, 0.0  ;;  %v976_v30 = vpop.f32.mrb[15].mxu1 }
 0x4c0   :  { %v643_v31 = vpack.c.bf16 %v642_v29, %v642_v29 }
 0x4c2   :  { %785 = vmatmul.mubr.bf16.vlgmr.msra.gmra.mrb[4].mxu0 %v643_v31 }
 0x595   :  { %v786_v39 = vpop.f32.mrb[4].mxu0 }
 0x596   :  { %v787_v40 = vadd.f32 %v786_v39, %v665_v37  ;;  %v788_v41 = vpop.f32.mrb[5].mxu0 }
 0x597   :  { %v789_v42 = vadd.f32 %v788_v41, %v669_v38  ;;  %v790_v43 = vpop.f32.mrb[6].mxu0 }
 0x598   :  { %v791_v44 = vpop.f32.mrb[7].mxu0 }
 0x599   :  { %v880_v45 = vpack.c.bf16 %v789_v42, %v787_v40 }
 0x59b   :  { %801 = vst [vmem:[#allocation11] sm:$0xff] %v880_v45 }
 0x59c   :  { %1171 = shalt.err (!%p1168_p2)
}
 0x59d   :  { %s1172_s20 = scalar_lea.hbm %s1501_s13, 128 }
 0x59e   :  { %p1173_p3 = scmp.ne.s32.totalorder %s1501_s13, %s1172_s20  ;;  %p1176_p4 = scmp.lt.u32.totalorder %s1172_s20, %s1501_s13 }
 0x5a0   :  { %p1178_p5 = pnand %p1176_p4, %p1173_p3 }
 0x5a2   :  { %1181 = shalt.err (!%p1178_p5)
}
 0x5a3   :  { %811 = dma.vmem_to_hbm [thread:$0]  %s809_s16, 128, %s1501_s13, [#allocation4]  }
 0x5a4   :  { %1188 = dma.done.wait [#allocation4], 128  }
 0x5a5   :  { %1189 = vsyncadd [#allocation4], 4294967168 }
 0x5a6   :  { %815 = vsyncpa [#allocation3], 1 }
 0x5a7   :  { %816 = vsyncpa [#allocation6], 1 }
 0x5a8   :  { %817 = vsyncpa [#allocation9], 1 }
 0x5a9   :  { %818 = vsyncpa [#allocation4], 1 }

</bundles_post_ra>
